<compile_context>
chip_gen: v5e
topology: v5e:2x2
jax: 0.10.0
libtpu: 0.0.40
codegen_flags: <defaults>
</compile_context>

<pallas_src>
import functools

import jax
import jax.numpy as jnp
from jax import lax
from jax.experimental import pallas as pl
from jax.experimental.pallas import tpu as pltpu

_NEG_INF = -1e30


def _round_up(a, b):
    return (a + b - 1) // b * b


def _cdiv(a, b):
    return -(-a // b)


def _attn_pool_kernel(x_ref, wvu_ref, bvu_ref, wwt_ref, bwt_ref,
                      aa_ref, m_ref, l_ref, acc_ref,
                      *, n_valid, tile_n, tiles_per_core, d):
    c = pl.program_id(0)          # core-split index  ("parallel")
    i = pl.program_id(1)          # N-tile index within this core ("arbitrary")

    @pl.when(i == 0)
    def _init():
        m_ref[...] = jnp.full(m_ref.shape, _NEG_INF, m_ref.dtype)
        l_ref[...] = jnp.zeros(l_ref.shape, l_ref.dtype)
        acc_ref[...] = jnp.zeros(acc_ref.shape, acc_ref.dtype)

    x = x_ref[...]                                                     # (TN, L)

    # Fused gated projections: one MXU matmul producing [V | U] pre-activations.
    vu = jnp.dot(x, wvu_ref[...],
                 preferred_element_type=jnp.float32) + bvu_ref[...]    # (TN, 2D) f32
    v = jnp.tanh(vu[:, :d])                                            # (TN, D)
    u = jax.nn.sigmoid(vu[:, d:])                                      # (TN, D)
    g = (v * u).astype(wwt_ref.dtype)                                  # (TN, D)

    # Attention scores, lane-dense (K, TN).  Contraction over the minor D dim of
    # both operands -- identical to flash attention's q.kT step, which Mosaic
    # lowers without a full (TN, D) XLU transpose.
    a_t = lax.dot_general(wwt_ref[...], g,
                          dimension_numbers=(((1,), (1,)), ((), ())),
                          preferred_element_type=jnp.float32) + bwt_ref[...]

    # Mask zero-padded rows past the true N (also keeps fully-padded tiles exact).
    col = ((c * tiles_per_core + i) * tile_n
           + lax.broadcasted_iota(jnp.int32, a_t.shape, 1))
    valid = col < n_valid
    a_t = jnp.where(valid, a_t, _NEG_INF)

    # Stream the raw (masked) scores out per tile; normalized in the wrapper.
    aa_ref[0] = a_t

    # Online softmax statistics + MXU-accumulated weighted feature sum.
    m_prev = m_ref[0]                                                  # (K, 1)
    m_new = jnp.maximum(m_prev, jnp.max(a_t, axis=1, keepdims=True))
    corr = jnp.exp(m_prev - m_new)                                     # (K, 1)
    e = jnp.where(valid, jnp.exp(a_t - m_new), 0.0)                    # (K, TN)
    l_ref[0] = corr * l_ref[0] + jnp.sum(e, axis=1, keepdims=True)
    part = lax.dot_general(e.astype(x.dtype), x,
                           dimension_numbers=(((1,), (0,)), ((), ())),
                           preferred_element_type=jnp.float32)         # (K, L)
    acc_ref[0] = corr * acc_ref[0] + part
    m_ref[0] = m_new


def attention_with_classifier(x, wv, bv, wu, bu, ww, bw, wc, bc, *,
                              tile_n=1024, core_split=2,
                              compute_dtype=jnp.float32, x_buffers=2):
    """x: (N, L).  Returns (pred (1, num_cls), afeat (1, L), AA (N, K)).

    For production, wrap the call in jax.jit so the small wrapper-side merge
    fuses into one XLA computation.
    """
    if x.ndim == 1:
        x = x[None, :]
    N, L = x.shape
    D = wv.shape[1]
    K = ww.shape[1]
    num_cls = wc.shape[1]

    nc = max(1, int(core_split))
    # N-tile sizing: multiple of 8 (sublane rule), capped by the per-core share.
    tn = min(_round_up(tile_n, 8), _round_up(max(_cdiv(N, nc), 1), 8))
    n_pad = _round_up(N, tn * nc)
    tiles_total = n_pad // tn
    tpc = tiles_total // nc
    x_pad = x if n_pad == N else jnp.pad(x, ((0, n_pad - N), (0, 0)))
    x_pad = x_pad.astype(compute_dtype)

    # Host-side packing: fuse V/U projections, transpose the tiny score weights.
    wvu = jnp.concatenate([wv, wu], axis=1).astype(compute_dtype)   # (L, 2D)
    bvu = jnp.concatenate([bv, bu], axis=1).astype(jnp.float32)     # (1, 2D)
    wwt = ww.T.astype(compute_dtype)                                # (K, D)
    bwt = bw.T.astype(jnp.float32)                                  # (K, 1)

    kernel = functools.partial(_attn_pool_kernel, n_valid=N, tile_n=tn,
                               tiles_per_core=tpc, d=D)

    x_spec_kwargs = {}
    if x_buffers != 2:   # e.g. 3 on v5e if the bf16 path becomes HBM-bound
        x_spec_kwargs["pipeline_mode"] = pl.Buffered(x_buffers)

    bpe = x_pad.dtype.itemsize
    flops = 2 * n_pad * L * 2 * D + 2 * n_pad * D * K + 2 * n_pad * K * L
    transcendentals = n_pad * (2 * D + 2 * K)
    bytes_accessed = (bpe * (n_pad * L + L * 2 * D + K * D)
                      + 4 * (2 * D + K + tiles_total * K * tn + nc * K * (L + 2)))

    aa_raw, m_c, l_c, acc_c = pl.pallas_call(
        kernel,
        out_shape=(
            jax.ShapeDtypeStruct((tiles_total, K, tn), jnp.float32),   # raw scores
            jax.ShapeDtypeStruct((nc, K, 1), jnp.float32),             # per-core m
            jax.ShapeDtypeStruct((nc, K, 1), jnp.float32),             # per-core l
            jax.ShapeDtypeStruct((nc, K, L), jnp.float32),             # per-core acc
        ),
        grid_spec=pltpu.PrefetchScalarGridSpec(
            num_scalar_prefetch=0,
            grid=(nc, tpc),
            in_specs=[
                pl.BlockSpec((tn, L), lambda c, i: (c * tpc + i, 0),
                             **x_spec_kwargs),                       # x (streamed)
                pl.BlockSpec((L, 2 * D), lambda c, i: (0, 0)),       # Wvu (resident)
                pl.BlockSpec((1, 2 * D), lambda c, i: (0, 0)),       # bvu
                pl.BlockSpec((K, D), lambda c, i: (0, 0)),           # Ww^T
                pl.BlockSpec((K, 1), lambda c, i: (0, 0)),           # bw^T
            ],
            out_specs=(
                pl.BlockSpec((1, K, tn), lambda c, i: (c * tpc + i, 0, 0)),
                pl.BlockSpec((1, K, 1), lambda c, i: (c, 0, 0)),
                pl.BlockSpec((1, K, 1), lambda c, i: (c, 0, 0)),
                pl.BlockSpec((1, K, L), lambda c, i: (c, 0, 0)),
            ),
        ),
        compiler_params=pltpu.CompilerParams(
            dimension_semantics=("parallel", "arbitrary")),
        cost_estimate=pl.CostEstimate(flops=flops,
                                      transcendentals=transcendentals,
                                      bytes_accessed=bytes_accessed),
    )(x_pad, wvu, bvu, wwt, bwt)

    # nc-way online-softmax merge across the per-core partials (tiny, f32).
    m_c = m_c[:, :, 0]                                      # (nc, K)
    l_c = l_c[:, :, 0]                                      # (nc, K)
    m_g = jnp.max(m_c, axis=0)                              # (K,)
    scale = jnp.exp(m_c - m_g)                              # (nc, K); 0 for empty chunks
    l_g = jnp.sum(l_c * scale, axis=0)                      # (K,)
    acc_g = jnp.sum(acc_c * scale[:, :, None], axis=0)      # (K, L)
    afeat = acc_g / l_g[:, None]                            # (K, L)

    # 1-fc classifier (droprate = 0 -> dropout is a no-op).
    pred = afeat @ wc.astype(jnp.float32) + bc.astype(jnp.float32)

    # Normalize the streamed raw scores; restore the module's (N, K) layout.
    aa = jnp.exp(aa_raw - m_g[None, :, None]) / l_g[None, :, None]
    aa = jnp.transpose(aa, (0, 2, 1)).reshape(n_pad, K)[:N]
    return pred, afeat, aa


def _init_params(key, L, D, K, num_cls):
    """Deterministic synthetic parameters (nn.Linear layers, W stored (in, out))."""
    ks = jax.random.split(key, 8)
    wv = jax.random.normal(ks[0], (L, D), jnp.float32) * 0.05
    bv = jax.random.normal(ks[1], (1, D), jnp.float32) * 0.05
    wu = jax.random.normal(ks[2], (L, D), jnp.float32) * 0.05
    bu = jax.random.normal(ks[3], (1, D), jnp.float32) * 0.05
    ww = jax.random.normal(ks[4], (D, K), jnp.float32) * 0.05
    bw = jax.random.normal(ks[5], (1, K), jnp.float32) * 0.05
    wc = jax.random.normal(ks[6], (L, num_cls), jnp.float32) * 0.05
    bc = jax.random.normal(ks[7], (1, num_cls), jnp.float32) * 0.05
    return wv, bv, wu, bu, ww, bw, wc, bc


if __name__ == "__main__":
    # Small shapes consistent with the module: N instances of L-dim features.
    N, L, D, K, num_cls = 300, 256, 128, 1, 2

    key = jax.random.PRNGKey(0)
    kx, kp = jax.random.split(key)
    x = jax.random.normal(kx, (N, L), jnp.float32)
    params = _init_params(kp, L, D, K, num_cls)
    wv, bv, wu, bu, ww, bw, wc, bc = params

    def reference(xr):
        v = jnp.tanh(xr @ wv + bv)
        u = jax.nn.sigmoid(xr @ wu + bu)
        a = (v * u) @ ww + bw
        aa_r = jax.nn.softmax(a, axis=0)
        afeat_r = jnp.sum(aa_r * xr, axis=0, keepdims=True)
        pred_r = afeat_r @ wc + bc
        return pred_r, afeat_r, aa_r

    # 1) f32 path: multiple N-tiles per core, a partial tile and a fully-padded tile.
    pred, afeat, aa = attention_with_classifier(x, *params, tile_n=128, core_split=2)
    jax.block_until_ready((pred, afeat, aa))
    pred_r, afeat_r, aa_r = reference(x)
    assert pred.shape == (1, num_cls) and afeat.shape == (1, L) and aa.shape == (N, K)
    assert jnp.allclose(aa, aa_r, atol=1e-5), "AA mismatch (f32)"
    assert jnp.allclose(afeat, afeat_r, atol=1e-4), "afeat mismatch (f32)"
    assert jnp.allclose(pred, pred_r, atol=1e-4), "pred mismatch (f32)"

    # 2) tiny bag: the second core chunk is entirely zero-padding (merge guard path).
    xs = x[:8]
    pred_s, afeat_s, aa_s = attention_with_classifier(xs, *params, tile_n=128, core_split=2)
    jax.block_until_ready((pred_s, afeat_s, aa_s))
    pred_sr, afeat_sr, aa_sr = reference(xs)
    assert aa_s.shape == (8, K)
    assert jnp.allclose(aa_s, aa_sr, atol=1e-5), "AA mismatch (small)"
    assert jnp.allclose(afeat_s, afeat_sr, atol=1e-4), "afeat mismatch (small)"
    assert jnp.allclose(pred_s, pred_sr, atol=1e-4), "pred mismatch (small)"

    # 3) bf16 MXU path (f32 accumulation / softmax statistics), loose tolerances.
    pred_b, afeat_b, aa_b = attention_with_classifier(
        x, *params, tile_n=1024, core_split=2, compute_dtype=jnp.bfloat16)
    jax.block_until_ready((pred_b, afeat_b, aa_b))
    assert jnp.allclose(aa_b, aa_r, atol=1e-3), "AA mismatch (bf16)"
    assert jnp.allclose(afeat_b, afeat_r, atol=1e-2), "afeat mismatch (bf16)"
    assert jnp.allclose(pred_b, pred_r, atol=1e-2), "pred mismatch (bf16)"

    print("KERNEL_OK")
</pallas_src>

<mosaic_0001>
module attributes {stable_mosaic.version = 11 : i64} {
  func.func @_attn_pool_kernel(%arg0: i32, %arg1: i32, %arg2: memref<128x256xf32, #tpu.memory_space<vmem>>, %arg3: memref<256x256xf32, #tpu.memory_space<vmem>>, %arg4: memref<1x256xf32, #tpu.memory_space<vmem>>, %arg5: memref<1x128xf32, #tpu.memory_space<vmem>>, %arg6: memref<1x1xf32, #tpu.memory_space<vmem>>, %arg7: memref<1x1x128xf32, #tpu.memory_space<vmem>>, %arg8: memref<1x1x1xf32, #tpu.memory_space<vmem>>, %arg9: memref<1x1x1xf32, #tpu.memory_space<vmem>>, %arg10: memref<1x1x256xf32, #tpu.memory_space<vmem>>) attributes {dimension_semantics = [#tpu.dimension_semantics<parallel>, #tpu.dimension_semantics<arbitrary>], iteration_bounds = array<i64: 2, 2>, scalar_prefetch = 0 : i64, scratch_operands = 0 : i64, tpu.core_type = #tpu.core_type<tc>, window_params = [{transform_indices = @transform_0, window_bounds = array<i64: 128, 256>}, {pipeline_mode = #tpu.pipeline_mode<synchronous>, transform_indices = @transform_1, window_bounds = array<i64: 256, 256>}, {pipeline_mode = #tpu.pipeline_mode<synchronous>, transform_indices = @transform_2, window_bounds = array<i64: 1, 256>}, {pipeline_mode = #tpu.pipeline_mode<synchronous>, transform_indices = @transform_3, window_bounds = array<i64: 1, 128>}, {pipeline_mode = #tpu.pipeline_mode<synchronous>, transform_indices = @transform_4, window_bounds = array<i64: 1, 1>}, {transform_indices = @transform_5, window_bounds = array<i64: 1, 1, 128>}, {transform_indices = @transform_6, window_bounds = array<i64: 1, 1, 1>}, {transform_indices = @transform_7, window_bounds = array<i64: 1, 1, 1>}, {transform_indices = @transform_8, window_bounds = array<i64: 1, 1, 256>}]} {
    %c0_i32 = arith.constant 0 : i32
    %0 = arith.cmpi eq, %arg1, %c0_i32 : i32
    %1 = arith.extui %0 : i1 to i32
    %c0_i32_0 = arith.constant 0 : i32
    %2 = arith.cmpi ne, %1, %c0_i32_0 : i32
    scf.if %2 {
      %cst_38 = arith.constant -1.000000e+30 : f32
      %69 = vector.broadcast %cst_38 : f32 to vector<1x1x1xf32>
      %c0_39 = arith.constant 0 : index
      %c0_40 = arith.constant 0 : index
      %c0_41 = arith.constant 0 : index
      %70 = vector.load %arg8[%c0_39, %c0_40, %c0_41] : memref<1x1x1xf32, #tpu.memory_space<vmem>>, vector<1x1x1xf32>
      tpu.vector_store %arg8[%c0_39, %c0_40, %c0_41], %69 {strides = array<i32>} : memref<1x1x1xf32, #tpu.memory_space<vmem>>, vector<1x1x1xf32>,
      %cst_42 = arith.constant 0.000000e+00 : f32
      %71 = vector.broadcast %cst_42 : f32 to vector<1x1x1xf32>
      %c0_43 = arith.constant 0 : index
      %c0_44 = arith.constant 0 : index
      %c0_45 = arith.constant 0 : index
      %72 = vector.load %arg9[%c0_43, %c0_44, %c0_45] : memref<1x1x1xf32, #tpu.memory_space<vmem>>, vector<1x1x1xf32>
      tpu.vector_store %arg9[%c0_43, %c0_44, %c0_45], %71 {strides = array<i32>} : memref<1x1x1xf32, #tpu.memory_space<vmem>>, vector<1x1x1xf32>,
      %cst_46 = arith.constant 0.000000e+00 : f32
      %73 = vector.broadcast %cst_46 : f32 to vector<1x1x256xf32>
      %c0_47 = arith.constant 0 : index
      %c0_48 = arith.constant 0 : index
      %c0_49 = arith.constant 0 : index
      %74 = vector.load %arg10[%c0_47, %c0_48, %c0_49] : memref<1x1x256xf32, #tpu.memory_space<vmem>>, vector<1x1x256xf32>
      tpu.vector_store %arg10[%c0_47, %c0_48, %c0_49], %73 {strides = array<i32>} : memref<1x1x256xf32, #tpu.memory_space<vmem>>, vector<1x1x256xf32>,
    } else {
    }
    %c0 = arith.constant 0 : index
    %c0_1 = arith.constant 0 : index
    %3 = vector.load %arg2[%c0, %c0_1] : memref<128x256xf32, #tpu.memory_space<vmem>>, vector<128x256xf32>
    %c0_2 = arith.constant 0 : index
    %c0_3 = arith.constant 0 : index
    %4 = vector.load %arg3[%c0_2, %c0_3] : memref<256x256xf32, #tpu.memory_space<vmem>>, vector<256x256xf32>
    %cst = arith.constant dense<0.000000e+00> : vector<128x256xf32>
    %5 = tpu.matmul %3, %4, %cst {dimension_numbers = #tpu.dot_dimension_numbers<[1], [0], [0], [1], [0, 0, 1, 1], [], []>} : vector<128x256xf32>, vector<256x256xf32>, vector<128x256xf32> -> vector<128x256xf32>
    %c0_4 = arith.constant 0 : index
    %c0_5 = arith.constant 0 : index
    %6 = vector.load %arg4[%c0_4, %c0_5] : memref<1x256xf32, #tpu.memory_space<vmem>>, vector<1x256xf32>
    %7 = vector.broadcast %6 : vector<1x256xf32> to vector<128x256xf32>
    %8 = arith.addf %5, %7 : vector<128x256xf32>
    %9 = vector.extract_strided_slice %8 {offsets = [0, 0], sizes = [128, 128], strides = [1, 1]} : vector<128x256xf32> to vector<128x128xf32>
    %10 = math.tanh %9 : vector<128x128xf32>
    %11 = vector.extract_strided_slice %8 {offsets = [0, 128], sizes = [128, 128], strides = [1, 1]} : vector<128x256xf32> to vector<128x128xf32>
    %12 = arith.negf %11 : vector<128x128xf32>
    %13 = math.exp %12 : vector<128x128xf32>
    %cst_6 = arith.constant 1.000000e+00 : f32
    %14 = vector.broadcast %cst_6 : f32 to vector<128x128xf32>
    %15 = arith.addf %14, %13 : vector<128x128xf32>
    %16 = arith.divf %14, %15 : vector<128x128xf32>
    %17 = arith.mulf %10, %16 : vector<128x128xf32>
    %c0_7 = arith.constant 0 : index
    %c0_8 = arith.constant 0 : index
    %18 = vector.load %arg5[%c0_7, %c0_8] : memref<1x128xf32, #tpu.memory_space<vmem>>, vector<1x128xf32>
    %cst_9 = arith.constant dense<0.000000e+00> : vector<1x128xf32>
    %19 = tpu.matmul %18, %17, %cst_9 {dimension_numbers = #tpu.dot_dimension_numbers<[1], [1], [0], [0], [0, 0, 1, 0], [], []>} : vector<1x128xf32>, vector<128x128xf32>, vector<1x128xf32> -> vector<1x128xf32>
    %c0_10 = arith.constant 0 : index
    %c0_11 = arith.constant 0 : index
    %20 = vector.load %arg6[%c0_10, %c0_11] : memref<1x1xf32, #tpu.memory_space<vmem>>, vector<1x1xf32>
    %21 = vector.broadcast %20 : vector<1x1xf32> to vector<1x128xf32>
    %22 = arith.addf %19, %21 : vector<1x128xf32>
    %c2_i32 = arith.constant 2 : i32
    %23 = arith.muli %arg0, %c2_i32 : i32
    %24 = arith.addi %23, %arg1 : i32
    %c128_i32 = arith.constant 128 : i32
    %25 = arith.muli %24, %c128_i32 : i32
    %26 = tpu.iota {dimensions = array<i32: 1>} : vector<1x128xi32>
    %27 = vector.broadcast %25 : i32 to vector<1x128xi32>
    %28 = arith.addi %27, %26 : vector<1x128xi32>
    %c300_i32 = arith.constant 300 : i32
    %29 = vector.broadcast %c300_i32 : i32 to vector<1x128xi32>
    %30 = arith.cmpi slt, %28, %29 : vector<1x128xi32>
    %cst_12 = arith.constant -1.000000e+30 : f32
    %31 = vector.broadcast %cst_12 : f32 to vector<1x128xf32>
    %32 = arith.select %30, %22, %31 : vector<1x128xi1>, vector<1x128xf32>
    %c0_13 = arith.constant 0 : index
    %c0_14 = arith.constant 0 : index
    %c0_15 = arith.constant 0 : index
    %33 = vector.load %arg7[%c0_13, %c0_14, %c0_15] : memref<1x1x128xf32, #tpu.memory_space<vmem>>, vector<1x1x128xf32>
    %34 = vector.shape_cast %33 : vector<1x1x128xf32> to vector<1x128xf32>
    %35 = vector.shape_cast %32 : vector<1x128xf32> to vector<1x1x128xf32>
    tpu.vector_store %arg7[%c0_13, %c0_14, %c0_15], %35 {strides = array<i32>} : memref<1x1x128xf32, #tpu.memory_space<vmem>>, vector<1x1x128xf32>,
    %c0_16 = arith.constant 0 : index
    %c0_17 = arith.constant 0 : index
    %c0_18 = arith.constant 0 : index
    %36 = vector.load %arg8[%c0_16, %c0_17, %c0_18] : memref<1x1x1xf32, #tpu.memory_space<vmem>>, vector<1x1x1xf32>
    %37 = vector.shape_cast %36 : vector<1x1x1xf32> to vector<1x1xf32>
    %cst_19 = arith.constant dense<0xFF800000> : vector<1xf32>
    %38 = vector.multi_reduction <maximumf>, %32, %cst_19 [1] : vector<1x128xf32> to vector<1xf32>
    %39 = vector.shape_cast %38 : vector<1xf32> to vector<1x1xf32>
    %40 = arith.maximumf %37, %39 : vector<1x1xf32>
    %41 = arith.subf %37, %40 : vector<1x1xf32>
    %42 = math.exp %41 : vector<1x1xf32>
    %43 = vector.broadcast %40 : vector<1x1xf32> to vector<1x128xf32>
    %44 = arith.subf %32, %43 : vector<1x128xf32>
    %45 = math.exp %44 : vector<1x128xf32>
    %cst_20 = arith.constant 0.000000e+00 : f32
    %46 = vector.broadcast %cst_20 : f32 to vector<1x128xf32>
    %47 = arith.select %30, %45, %46 : vector<1x128xi1>, vector<1x128xf32>
    %c0_21 = arith.constant 0 : index
    %c0_22 = arith.constant 0 : index
    %c0_23 = arith.constant 0 : index
    %48 = vector.load %arg9[%c0_21, %c0_22, %c0_23] : memref<1x1x1xf32, #tpu.memory_space<vmem>>, vector<1x1x1xf32>
    %49 = vector.shape_cast %48 : vector<1x1x1xf32> to vector<1x1xf32>
    %50 = arith.mulf %42, %49 : vector<1x1xf32>
    %cst_24 = arith.constant dense<0.000000e+00> : vector<1xf32>
    %51 = vector.multi_reduction <add>, %47, %cst_24 [1] : vector<1x128xf32> to vector<1xf32>
    %52 = vector.shape_cast %51 : vector<1xf32> to vector<1x1xf32>
    %53 = arith.addf %50, %52 : vector<1x1xf32>
    %c0_25 = arith.constant 0 : index
    %c0_26 = arith.constant 0 : index
    %c0_27 = arith.constant 0 : index
    %54 = vector.load %arg9[%c0_25, %c0_26, %c0_27] : memref<1x1x1xf32, #tpu.memory_space<vmem>>, vector<1x1x1xf32>
    %55 = vector.shape_cast %54 : vector<1x1x1xf32> to vector<1x1xf32>
    %56 = vector.shape_cast %53 : vector<1x1xf32> to vector<1x1x1xf32>
    tpu.vector_store %arg9[%c0_25, %c0_26, %c0_27], %56 {strides = array<i32>} : memref<1x1x1xf32, #tpu.memory_space<vmem>>, vector<1x1x1xf32>,
    %cst_28 = arith.constant dense<0.000000e+00> : vector<1x256xf32>
    %57 = tpu.matmul %47, %3, %cst_28 {dimension_numbers = #tpu.dot_dimension_numbers<[1], [0], [0], [1], [0, 0, 1, 1], [], []>} : vector<1x128xf32>, vector<128x256xf32>, vector<1x256xf32> -> vector<1x256xf32>
    %c0_29 = arith.constant 0 : index
    %c0_30 = arith.constant 0 : index
    %c0_31 = arith.constant 0 : index
    %58 = vector.load %arg10[%c0_29, %c0_30, %c0_31] : memref<1x1x256xf32, #tpu.memory_space<vmem>>, vector<1x1x256xf32>
    %59 = vector.shape_cast %58 : vector<1x1x256xf32> to vector<1x256xf32>
    %60 = vector.broadcast %42 : vector<1x1xf32> to vector<1x256xf32>
    %61 = arith.mulf %60, %59 : vector<1x256xf32>
    %62 = arith.addf %61, %57 : vector<1x256xf32>
    %c0_32 = arith.constant 0 : index
    %c0_33 = arith.constant 0 : index
    %c0_34 = arith.constant 0 : index
    %63 = vector.load %arg10[%c0_32, %c0_33, %c0_34] : memref<1x1x256xf32, #tpu.memory_space<vmem>>, vector<1x1x256xf32>
    %64 = vector.shape_cast %63 : vector<1x1x256xf32> to vector<1x256xf32>
    %65 = vector.shape_cast %62 : vector<1x256xf32> to vector<1x1x256xf32>
    tpu.vector_store %arg10[%c0_32, %c0_33, %c0_34], %65 {strides = array<i32>} : memref<1x1x256xf32, #tpu.memory_space<vmem>>, vector<1x1x256xf32>,
    %c0_35 = arith.constant 0 : index
    %c0_36 = arith.constant 0 : index
    %c0_37 = arith.constant 0 : index
    %66 = vector.load %arg8[%c0_35, %c0_36, %c0_37] : memref<1x1x1xf32, #tpu.memory_space<vmem>>, vector<1x1x1xf32>
    %67 = vector.shape_cast %66 : vector<1x1x1xf32> to vector<1x1xf32>
    %68 = vector.shape_cast %40 : vector<1x1xf32> to vector<1x1x1xf32>
    tpu.vector_store %arg8[%c0_35, %c0_36, %c0_37], %68 {strides = array<i32>} : memref<1x1x1xf32, #tpu.memory_space<vmem>>, vector<1x1x1xf32>,
    return
  }
  func.func @transform_0(%arg0: i32, %arg1: i32) -> (i32, i32) {
    %c2_i32 = arith.constant 2 : i32
    %0 = arith.muli %arg0, %c2_i32 : i32
    %1 = arith.addi %0, %arg1 : i32
    %c0_i32 = arith.constant 0 : i32
    %c0_i32_0 = arith.constant 0 : i32
    return %1, %c0_i32 : i32, i32
  }
  func.func @transform_1(%arg0: i32, %arg1: i32) -> (i32, i32) {
    %c0_i32 = arith.constant 0 : i32
    %c0_i32_0 = arith.constant 0 : i32
    %c0_i32_1 = arith.constant 0 : i32
    return %c0_i32, %c0_i32_0 : i32, i32
  }
  func.func @transform_2(%arg0: i32, %arg1: i32) -> (i32, i32) {
    %c0_i32 = arith.constant 0 : i32
    %c0_i32_0 = arith.constant 0 : i32
    %c0_i32_1 = arith.constant 0 : i32
    return %c0_i32, %c0_i32_0 : i32, i32
  }
  func.func @transform_3(%arg0: i32, %arg1: i32) -> (i32, i32) {
    %c0_i32 = arith.constant 0 : i32
    %c0_i32_0 = arith.constant 0 : i32
    %c0_i32_1 = arith.constant 0 : i32
    return %c0_i32, %c0_i32_0 : i32, i32
  }
  func.func @transform_4(%arg0: i32, %arg1: i32) -> (i32, i32) {
    %c0_i32 = arith.constant 0 : i32
    %c0_i32_0 = arith.constant 0 : i32
    %c0_i32_1 = arith.constant 0 : i32
    return %c0_i32, %c0_i32_0 : i32, i32
  }
  func.func @transform_5(%arg0: i32, %arg1: i32) -> (i32, i32, i32) {
    %c2_i32 = arith.constant 2 : i32
    %0 = arith.muli %arg0, %c2_i32 : i32
    %1 = arith.addi %0, %arg1 : i32
    %c0_i32 = arith.constant 0 : i32
    %c0_i32_0 = arith.constant 0 : i32
    %c0_i32_1 = arith.constant 0 : i32
    return %1, %c0_i32, %c0_i32_0 : i32, i32, i32
  }
  func.func @transform_6(%arg0: i32, %arg1: i32) -> (i32, i32, i32) {
    %c0_i32 = arith.constant 0 : i32
    %c0_i32_0 = arith.constant 0 : i32
    %c0_i32_1 = arith.constant 0 : i32
    return %arg0, %c0_i32, %c0_i32_0 : i32, i32, i32
  }
  func.func @transform_7(%arg0: i32, %arg1: i32) -> (i32, i32, i32) {
    %c0_i32 = arith.constant 0 : i32
    %c0_i32_0 = arith.constant 0 : i32
    %c0_i32_1 = arith.constant 0 : i32
    return %arg0, %c0_i32, %c0_i32_0 : i32, i32, i32
  }
  func.func @transform_8(%arg0: i32, %arg1: i32) -> (i32, i32, i32) {
    %c0_i32 = arith.constant 0 : i32
    %c0_i32_0 = arith.constant 0 : i32
    %c0_i32_1 = arith.constant 0 : i32
    return %arg0, %c0_i32, %c0_i32_0 : i32, i32, i32
  }
}

</mosaic_0001>

<bundles_post_ra>
// kernel: tpu_custom_call.1
= control target key start
LH: loop header
LB: loop body
LE: loop exit
PB: predicated region body
PF: predicated region fallthrough
CT: control target
= control target key end

     0   :  { %s2641_s0 = inlined_call_operand.hbm [shape: f32[512,256], index: 0, kind: input, shape index: {}]   ;;  %s2642_s1 = inlined_call_operand.hbm [shape: f32[256,256], index: 1, kind: input, shape index: {}]   ;;  %s2643_s2 = inlined_call_operand.vmem [shape: f32[1,256], index: 2, kind: input, shape index: {}]   ;;  %s2644_s3 = inlined_call_operand.vmem [shape: f32[1,128], index: 3, kind: input, shape index: {}]   ;;  %s2645_s4 = inlined_call_operand.<no memory space> [shape: f32[1,1], index: 4, kind: input, shape index: {}]   ;;  %s2646_s5 = inlined_call_operand.hbm [shape: f32[4,1,128], index: 5, kind: output, shape index: {0}]   ;;  %s2647_s6 = inlined_call_operand.vmem [shape: f32[2,1,1], index: 6, kind: output, shape index: {1}]   ;;  %s2648_s7 = inlined_call_operand.vmem [shape: f32[2,1,1], index: 7, kind: output, shape index: {2}]   ;;  %s2649_s8 = inlined_call_operand.hbm [shape: f32[2,1,256], index: 8, kind: output, shape index: {3}]  }
   0x1   :  { %2666 = sst [smem:[#allocation24_spill]] %s2641_s0  ;;  %v14_v0 = vstv %s2645_s4 }
   0x2   :  { %2667 = sst [smem:[#allocation25_spill]] %s2642_s1  ;;  %15 = vst [vmem:[#allocation2] sm:$0x1] %v14_v0 }
   0x3   :  { %2668 = sst [smem:[#allocation26_spill]] %s2643_s2 }
   0x4   :  { %2669 = sst [smem:[#allocation27_spill]] %s2644_s3 }
   0x5   :  { %2670 = sst [smem:[#allocation28_spill]] %s2646_s5 }
   0x6   :  { %2671 = sst [smem:[#allocation29_spill]] %s2648_s7 }
   0x7   :  { %2672 = sst [smem:[#allocation30_spill]] %s2649_s8 }
   0x8   :  { %16 = vsyncpa [#allocation4], 0 }
   0x9   :  { %18 = vsyncpa [#allocation4 + $0x1], 0 }
   0xa   :  { %19 = vsyncpa [#allocation7], 0 }
   0xb   :  { %20 = vsyncpa [#allocation5], 0 }
   0xc   :  { %22 = vsyncpa [#allocation5 + $0x1], 0 }
   0xd   :  { %23 = vsyncpa [#allocation10], 0 }
   0xe   :  { %25 = vsyncpa [#allocation10 + $0x1], 0  ;;  %s1987_s29 = smov 0   ;;  %s1989_s30 = smov 0  }
   0xf   :  { %s1991_s9 = smov 0   ;;  %s1993_s10 = smov 0  }
  0x10   :  { %s1995_s11 = smov 0   ;;  %s1997_s12 = smov 0  }
  0x11   :  { %s1999_s4 = smov 0   ;;  %s2001_s13 = smov 0  }
  0x12   :  { %s2003_s14 = smov 0   ;;  %s2005_s15 = smov 0  }
  0x13   :  { %s2007_s16 = smov 0  }
  0x14 LB: > { %2673 = sst [smem:[#allocation15_spill]] %s1891_s29  ;;  %s1442_s17 = sadd.s32 4294967295, %s1931_s16   ;;  %s1931_s16 = sphi %s2007_s16, %s31_s16   ;;  %s1927_s15 = sphi %s2005_s15, %s2727_s15   ;;  %s1923_s14 = sphi %s2003_s14, %s2726_s14   ;;  %s1919_s13 = sphi %s2001_s13, %s2725_s13   ;;  %s1915_s4 = sphi %s1999_s4, %s2717_s4   ;;  %s1911_s12 = sphi %s1997_s12, %s2724_s12   ;;  %s1907_s11 = sphi %s1995_s11, %s2723_s11   ;;  %s1903_s10 = sphi %s1993_s10, %s2722_s10   ;;  %s1899_s9 = sphi %s1991_s9, %s2721_s9   ;;  %s1895_s30 = sphi %s1989_s30, %s2720_s30   ;;  %s1891_s29 = sphi %s1987_s29, %s2719_s29  }
  0x15   : > { %2674 = sst [smem:[#allocation16_spill]] %s1903_s10  ;;  %s1443_s18 = sadd.s32 4294967294, %s1931_s16  }
  0x16   : > { %2675 = sst [smem:[#allocation17_spill]] %s1915_s4  ;;  %p67_p0 = scmp.ne.s32.totalorder %s1907_s11, %s1903_s10 }
  0x17   : > { %2676 = sst [smem:[#allocation18_spill]] %s1923_s14  ;;  %p2046_p1 = scmp.eq.s32.totalorder %s1442_s17, 0 }
  0x18   : > { %p2050_p2 = scmp.eq.s32.totalorder %s1442_s17, 3  ;;  %p185_p3 = scmp.eq.s32.totalorder %s1443_s18, 3 }
  0x19   : > { %p2056_p4 = por %p2046_p1, %p67_p0  ;;  %p256_p5 = scmp.ne.s32.totalorder %s1899_s9, %s1895_s30 }
  0x1a   : > { %p2062_p6 = por %p185_p3, %p67_p0  ;;  %p262_p7 = scmp.ne.s32.totalorder %s1895_s30, %s1891_s29 }
  0x1b   : > { %p2070_p8 = por %p256_p5, %p2050_p2  ;;  %p1448_p9 = scmp.ge.s32.totalorder %s1931_s16, 1 }
  0x1c   : > { %s2680_s22 = scalar_select %p2062_p6, 1, 0 }
  0x1d   : > { %s2682_s23 = scalar_select %p2070_p8, 1, 0 }
  0x1e   : > { %2681 = sst [smem:[#allocation19_spill]] %s2680_s22  ;;  %p2075_p10 = por %p262_p7, %p185_p3 }
  0x1f   : > { %2683 = sst [smem:[#allocation20_spill]] %s2682_s23  ;;  %p270_p11 = scmp.lt.s32.totalorder %s1931_s16, 5 }
  0x20   : > { %s2684_s24 = scalar_select %p2075_p10, 1, 0 }
  0x21   : > { %s2686_s1 = sld [smem:[#allocation25_spill]]  ;;  %p2083_p12 = pnand %p1448_p9, %p270_p11 }
  0x22   : > { %2685 = sst [smem:[#allocation21_spill]] %s2684_s24  ;;  %s1933_s17 = smov [#allocation6]  }
  0x23   : > { %p1498_p13 = pneg %p2083_p12  ;;  %s283_s18 = sshll.u32 %s1933_s17, 4  ;;  %s284_s18 = int_to_ptr.vmem [resolvable:$true] %s283_s18 }
  0x24   : > { %s2653_s25 = smov 256   ;;  %s2654_s26 = smov 16  }
  0x25   : > { %p1499_p0 = pnand %p1498_p13, %p2046_p1  ;;  %s43_s24 = sadd.s32 1, %s1927_s15 }
  0x26   : > { %s1444_s29 = sshll.u32 %s1927_s15, 1  ;;  %s54_s17 = sadd.s32 1, %s1911_s12 }
  0x27   : > { %s281_s27 = sshll.u32 %s2686_s1, 4  ;;  %s40_s1 = sadd.s32 1, %s1923_s14  ;;  %s282_s27 = int_to_ptr.hbm [resolvable:$true] %s281_s27 }
  0x28   : > { %1501 = dma.hbm_to_vmem [thread:$0]  (!%p1499_p0), %s282_s27, 8192, %s284_s18, [#allocation7], %s2653_s25, %s2653_s25, %s2654_s26  }
  0x29   : > { %p41_p3 = scmp.ge.s32.totalorder %s40_s1, 2  ;;  %p61_p5 = scmp.ne.s32.totalorder %s1911_s12, %s1907_s11 }
  0x2a   : > { %p62_p9 = scmp.eq.s32.totalorder %s1931_s16, 0  ;;  %s48_s22 = sadd.s32 %s1923_s14, %s1444_s29 }
  0x2b   : > { %s2729_s1 = smov (%p41_p3, %s40_s1), 0  ;;  %s2731_s24 = smov (!%p41_p3, %s43_s24), %s1927_s15 }
  0x2c   : > { %p45_p7 = scmp.ge.s32.totalorder %s2731_s24, 2  ;;  %p2107_p11 = por %p2050_p2, %p61_p5 }
  0x2d   : > { %p2113_p13 = por %p62_p9, %p61_p5  ;;  %s246_s25 = sadd.s32 1, %s1899_s9 }
  0x2e   : > { %s2688_s27 = scalar_select %p2107_p11, 1, 0 }
  0x2f   : > { %s2733_s24 = smov (%p45_p7, %s2731_s24), 0  ;;  %p1514_p2 = scmp.lt.s32.totalorder %s1931_s16, 4 }
  0x30   : > { %2689 = sst [smem:[#allocation22_spill]] %s2688_s27  ;;  %s1445_s26 = sshll.u32 %s2733_s24, 1 }
  0x31   : > { %2690 = sst [smem:[#allocation23_spill]] %s2733_s24  ;;  %s243_s10 = ssub.s32 %s1927_s15, %s2733_s24 }
  0x32   : > { %s50_s23 = sadd.s32 %s1445_s26, %s2729_s1  ;;  %p244_p0 = scmp.eq.s32.totalorder %s243_s10, 0 }
  0x33   : > { %s51_s29 = ssub.s32 %s48_s22, %s50_s23  ;;  %s306_s20 = sand.u32 1, %s1911_s12  }
  0x34   : > { %p52_p3 = scmp.eq.s32.totalorder %s51_s29, 0  ;;  %s1451_s5 = sshll.u32 %s306_s20, 8 }
  0x35   : > { %s2125_s14 = scalar_select %p244_p0, %s1899_s9, %s246_s25  }
  0x36   : > { %s2128_s8 = scalar_select %p52_p3, %s1911_s12, %s54_s17  }
  0x37   : > { %s1487_s27 = sshll.u32 %s48_s22, 8  ;;  %s2692_s0 = sld [smem:[#allocation24_spill]] }
  0x38   : > { %s310_s24 = scalar_lea.vmem [#allocation3], %s1451_s5  ;;  %p1503_p5 = pnand %p1514_p2, %p2113_p13 }
  0x39   : > { %s321_s26 = sshll.u32 %s310_s24, 4  ;;  %s307_s10 = scalar_lea.sflag [#allocation4], %s306_s20  ;;  %s322_s26 = int_to_ptr.vmem [resolvable:$true] %s321_s26 }
  0x3a   : > { %s2693_s23 = smov 16   ;;  %s2694_s25 = smov 256  }
  0x3b   : > { %333 = sbr.rel (%p2083_p12) target bundleno = 985 (0x3d9), region = 40  ;;  %s2143_s2 = sand.u32 (!%p2083_p12), 1, %s1907_s11  }
  0x3c   : > { %s1457_s3 = sshll.u32 (!%p2083_p12), %s2143_s2, 8  ;;  %s336_s5 = scalar_lea.sflag (!%p2083_p12), [#allocation4], %s2143_s2 }
  0x3d   : > { %s318_s4 = scalar_lea.hbm %s2692_s0, %s1487_s27 }
  0x3e   : > { %s319_s7 = sshll.u32 %s318_s4, 4  ;;  %s2147_s4 = scalar_lea.vmem (!%p2083_p12), [#allocation3], %s1457_s3  ;;  %s320_s7 = int_to_ptr.hbm [resolvable:$true] %s319_s7 }
  0x3f   : > { %1505 = dma.hbm_to_vmem [thread:$0]  (!%p1503_p5), %s320_s7, 4096, %s322_s26, %s307_s10, %s2694_s25, %s2694_s25, %s2693_s23  }
  0x40   : > { %1874 = dma.done.wait (%p2056_p4), %s336_s5, 4096  }
  0x41   : > { %1876 = vsyncadd (%p2056_p4), %s336_s5, 4294963200 }
  0x42   : > { %1878 = dma.done.wait (%p2046_p1), [#allocation7], 8192  }
  0x43   : > { %1880 = vsyncadd (%p2046_p1), [#allocation7], 4294959104  ;;  %s2664_s7 = sand.u32 1, %s1895_s30   ;;  %p393_p12 = scmp.lt.s32.totalorder %s1919_s13, 1 }
  0x44   : > { %s1459_s22 = sshll.u32 %s2664_s7, 1  ;;  %s2695_s29 = sld [smem:[#allocation29_spill]] }
  0x45   : > { %s394_s24 = scalar_select %p393_p12, %s1919_s13, 1 }
  0x46   : > { %s370_s20 = scalar_lea.vmem [#allocation8], %s2143_s2  ;;  %s2173_s26 = scalar_lea.vmem [#allocation9], %s1459_s22 }
  0x47   : > { %s2165_s21 = scalar_lea.vmem %s2647_s6, %s394_s24  ;;  %s2696_s10 = sld [smem:[#allocation17_spill]] }
  0x4a   : > { %s2170_s19 = scalar_lea.vmem %s2695_s29, %s394_s24 }
  0x4d   : > { %p1460_p1 = scmp.ne.s32.totalorder %s2696_s10, 0 }
  0x4f   : > { %402 = sbr.rel (%p1460_p1) target bundleno = 88 (0x58), region = 52 }
  0x54   : > { %vm403_vm0 = vcmask 0   ;;  %v406_v1 = vlaneseq  ;;  %v1936_v2 = vmov -1e+30   ;;  %v1937_v3 = vmov 0.0  }
  0x55   : > { %404 = vst.msk [vmem:[%s2165_s21] sm:$0x1] %vm403_vm0, %v1936_v2 }
  0x56   : > { %405 = vst.msk [vmem:[%s2170_s19] sm:$0x1] %vm403_vm0, %v1937_v3  ;;  %vm408_vm1 = vcmp.lt.s32.totalorder %v406_v1, 256 }
  0x57   : > { %410 = vst.msk [vmem:[%s2173_s26] sm:$0x3] %vm408_vm1, %v1937_v3 }
  0x58 PF: > { %v474_v4 = vld [vmem:[#allocation6 + $0xf8] sm:$0xff]  ;;  %v472_v5 = vld [vmem:[#allocation6 + $0xe8] sm:$0xff]  ;;  %v473_v17 = vld [vmem:[#allocation6 + $0xf0] sm:$0xff]  ;;  %s2697_s3 = sld [smem:[#allocation26_spill]]  ;;  %s2665_s28 = sshll.u32 %s1919_s13, 1 }
  0x59   : > { %v506_v6 = vld [vmem:[#allocation6 + $0x1f8] sm:$0xff]  ;;  %643 = vmatpush.msra.mxu2 %v474_v4  ;;  %v504_v7 = vld [vmem:[#allocation6 + $0x1e8] sm:$0xff]  ;;  %513 = vmatpush.msra.mxu0 %v473_v17  ;;  %v471_v19 = vld [vmem:[#allocation6 + $0xe0] sm:$0xff]  ;;  %s2704_s5 = sld [smem:[#allocation17_spill]] }
  0x5a   : > { %708 = vmatpush.msra.mxu3 %v506_v6  ;;  %v470_v8 = vld [vmem:[#allocation6 + $0xd8] sm:$0xff]  ;;  %v468_v10 = vld [vmem:[#allocation6 + $0xc8] sm:$0xff]  ;;  %v505_v20 = vld [vmem:[#allocation6 + $0x1f0] sm:$0xff]  ;;  %s2705_s24 = sld [smem:[#allocation27_spill]] }
  0x5b   : > { %v502_v9 = vld [vmem:[#allocation6 + $0x1d8] sm:$0xff]  ;;  %644 = vmatpush.msra.mxu2 %v472_v5  ;;  %v500_v11 = vld [vmem:[#allocation6 + $0x1c8] sm:$0xff]  ;;  %v469_v21 = vld [vmem:[#allocation6 + $0xd0] sm:$0xff]  ;;  %514 = vmatpush.msra.mxu0 %v471_v19  ;;  %s2707_s10 = sld [smem:[#allocation28_spill]] }
  0x5c   : > { %709 = vmatpush.msra.mxu3 %v504_v7  ;;  %v466_v12 = vld [vmem:[#allocation6 + $0xb8] sm:$0xff]  ;;  %v464_v14 = vld [vmem:[#allocation6 + $0xa8] sm:$0xff]  ;;  %v503_v22 = vld [vmem:[#allocation6 + $0x1e0] sm:$0xff]  ;;  %578 = vmatpush.msra.mxu1 %v505_v20 }
  0x5d   : > { %645 = vmatpush.msra.mxu2 %v470_v8  ;;  %v498_v13 = vld [vmem:[#allocation6 + $0x1b8] sm:$0xff]  ;;  %v496_v15 = vld [vmem:[#allocation6 + $0x1a8] sm:$0xff]  ;;  %v467_v25 = vld [vmem:[#allocation6 + $0xc0] sm:$0xff]  ;;  %515 = vmatpush.msra.mxu0 %v469_v21 }
  0x5e   : > { %710 = vmatpush.msra.mxu3 %v502_v9  ;;  %v462_v16 = vld [vmem:[#allocation6 + $0x98] sm:$0xff]  ;;  %v460_v23 = vld [vmem:[#allocation6 + $0x88] sm:$0xff]  ;;  %v501_v26 = vld [vmem:[#allocation6 + $0x1d0] sm:$0xff]  ;;  %579 = vmatpush.msra.mxu1 %v503_v22 }
  0x5f   : > { %646 = vmatpush.msra.mxu2 %v468_v10  ;;  %v494_v18 = vld [vmem:[#allocation6 + $0x198] sm:$0xff]  ;;  %v492_v24 = vld [vmem:[#allocation6 + $0x188] sm:$0xff]  ;;  %v465_v29 = vld [vmem:[#allocation6 + $0xb0] sm:$0xff]  ;;  %516 = vmatpush.msra.mxu0 %v467_v25  ;;  %s2544_s17 = sadd.s32 %s2704_s5, %s2665_s28 }
  0x60   : > { %711 = vmatpush.msra.mxu3 %v500_v11  ;;  %v458_v27 = vld [vmem:[#allocation6 + $0x78] sm:$0xff]  ;;  %v499_v30 = vld [vmem:[#allocation6 + $0x1c0] sm:$0xff]  ;;  %v456_v31 = vld [vmem:[#allocation6 + $0x68] sm:$0xff]  ;;  %580 = vmatpush.msra.mxu1 %v501_v26  ;;  %s1478_s27 = sshll.u32 %s2544_s17, 7 }
  0x61   : > { %647 = vmatpush.msra.mxu2 %v466_v12  ;;  %v490_v28 = vld [vmem:[#allocation6 + $0x178] sm:$0xff]  ;;  %v488_v32 = vld [vmem:[#allocation6 + $0x168] sm:$0xff]  ;;  %v463_v33 = vld [vmem:[#allocation6 + $0xa0] sm:$0xff]  ;;  %517 = vmatpush.msra.mxu0 %v465_v29  ;;  %s2708_s23 = smov %s2707_s10  ;;  %s1256_s25 = scalar_lea.hbm %s2707_s10, %s2544_s17 }
  0x62   : > { %712 = vmatpush.msra.mxu3 %v498_v13  ;;  %v497_v34 = vld [vmem:[#allocation6 + $0x1b0] sm:$0xff]  ;;  %v454_v35 = vld [vmem:[#allocation6 + $0x58] sm:$0xff]  ;;  %581 = vmatpush.msra.mxu1 %v499_v30  ;;  %v495_v38 = vld [vmem:[#allocation6 + $0x1a0] sm:$0xff]  ;;  %s1260_s5 = sshll.u32 %s1256_s25, 4  ;;  %s1793_s28 = scalar_lea.hbm %s2708_s23, 4  ;;  %s1261_s5 = int_to_ptr.hbm [resolvable:$true] %s1260_s5 }
  0x63   : > { %648 = vmatpush.msra.mxu2 %v464_v14  ;;  %v486_v36 = vld [vmem:[#allocation6 + $0x158] sm:$0xff]  ;;  %v461_v37 = vld [vmem:[#allocation6 + $0x90] sm:$0xff]  ;;  %v452_v39 = vld [vmem:[#allocation6 + $0x48] sm:$0xff]  ;;  %518 = vmatpush.msra.mxu0 %v463_v33  ;;  %s1787_s22 = sshra.s32 %s1261_s5, 4  ;;  %s1788_s22 = int_to_ptr.hbm [resolvable:$true] %s1787_s22 }
  0x64   : > { %713 = vmatpush.msra.mxu3 %v496_v15  ;;  %v484_v40 = vld [vmem:[#allocation6 + $0x148] sm:$0xff]  ;;  %582 = vmatpush.msra.mxu1 %v497_v34  ;;  %v459_v41 = vld [vmem:[#allocation6 + $0x80] sm:$0xff]  ;;  %v493_v42 = vld [vmem:[#allocation6 + $0x190] sm:$0xff]  ;;  %p1794_p13 = scmp.lt.s32.totalorder %s1788_s22, %s2708_s23 }
  0x65   : > { %649 = vmatpush.msra.mxu2 %v462_v16  ;;  %v450_v43 = vld [vmem:[#allocation6 + $0x38] sm:$0xff]  ;;  %519 = vmatpush.msra.mxu0 %v461_v37  ;;  %v457_v45 = vld [vmem:[#allocation6 + $0x70] sm:$0xff]  ;;  %v491_v46 = vld [vmem:[#allocation6 + $0x180] sm:$0xff] }
  0x66   : > { %714 = vmatpush.msra.mxu3 %v494_v18  ;;  %v482_v44 = vld [vmem:[#allocation6 + $0x138] sm:$0xff]  ;;  %583 = vmatpush.msra.mxu1 %v495_v38  ;;  %v448_v47 = vld [vmem:[#allocation6 + $0x28] sm:$0xff]  ;;  %v455_v49 = vld [vmem:[#allocation6 + $0x60] sm:$0xff] }
  0x67   : > { %650 = vmatpush.msra.mxu2 %v460_v23  ;;  %v480_v48 = vld [vmem:[#allocation6 + $0x128] sm:$0xff]  ;;  %520 = vmatpush.msra.mxu0 %v459_v41  ;;  %v489_v50 = vld [vmem:[#allocation6 + $0x170] sm:$0xff]  ;;  %v446_v51 = vld [vmem:[#allocation6 + $0x18] sm:$0xff] }
  0x68   : > { %715 = vmatpush.msra.mxu3 %v492_v24  ;;  %584 = vmatpush.msra.mxu1 %v493_v42  ;;  %v478_v52 = vld [vmem:[#allocation6 + $0x118] sm:$0xff]  ;;  %v453_v53 = vld [vmem:[#allocation6 + $0x50] sm:$0xff]  ;;  %v487_v54 = vld [vmem:[#allocation6 + $0x160] sm:$0xff] }
  0x69   : > { %651 = vmatpush.msra.mxu2 %v458_v27  ;;  %521 = vmatpush.msra.mxu0 %v457_v45  ;;  %v444_v55 = vld [vmem:[#allocation6 + $0x8] sm:$0xff]  ;;  %v2180_v57 = vld [vmem:[%s2147_s4] sm:$0xff]  ;;  %v485_v60 = vld [vmem:[#allocation6 + $0x150] sm:$0xff] }
  0x6a   : > { %716 = vmatpush.msra.mxu3 %v490_v28  ;;  %585 = vmatpush.msra.mxu1 %v491_v46  ;;  %v476_v56 = vld [vmem:[#allocation6 + $0x108] sm:$0xff]  ;;  %v451_v59 = vld [vmem:[#allocation6 + $0x40] sm:$0xff]  ;;  %v449_v61 = vld [vmem:[#allocation6 + $0x30] sm:$0xff] }
  0x6b   : > { %652 = vmatpush.msra.mxu2 %v456_v31  ;;  %522 = vmatpush.msra.mxu0 %v455_v49  ;;  %v2183_v58 = vld [vmem:[%s2147_s4 + $0x8] sm:$0xff]  ;;  %v483_v62 = vld [vmem:[#allocation6 + $0x140] sm:$0xff]  ;;  %v481_v0 = vld [vmem:[#allocation6 + $0x130] sm:$0xff] }
  0x6c   : > { %717 = vmatpush.msra.mxu3 %v488_v32  ;;  %586 = vmatpush.msra.mxu1 %v489_v50  ;;  %v447_v63 = vld [vmem:[#allocation6 + $0x20] sm:$0xff]  ;;  %v445_v1 = vld [vmem:[#allocation6 + $0x10] sm:$0xff]  ;;  %v2191_v4 = vld [vmem:[%s2147_s4 + $0x18] sm:$0xff] }
  0x6d   : > { %653 = vmatpush.msra.mxu2 %v454_v35  ;;  %523 = vmatpush.msra.mxu0 %v453_v53  ;;  %v479_v2 = vld [vmem:[#allocation6 + $0x120] sm:$0xff]  ;;  %v2188_v3 = vld [vmem:[%s2147_s4 + $0x10] sm:$0xff]  ;;  %v2201_v9 = vld [vmem:[%s2147_s4 + $0x28] sm:$0xff] }
  0x6e   : > { %718 = vmatpush.msra.mxu3 %v486_v36  ;;  %587 = vmatpush.msra.mxu1 %v487_v54  ;;  %v443_v5 = vld [vmem:[#allocation6] sm:$0xff]  ;;  %v477_v6 = vld [vmem:[#allocation6 + $0x110] sm:$0xff]  ;;  %v2211_v11 = vld [vmem:[%s2147_s4 + $0x38] sm:$0xff] }
  0x6f   : > { %654 = vmatpush.msra.mxu2 %v452_v39  ;;  %524 = vmatpush.msra.mxu0 %v451_v59  ;;  %v475_v7 = vld [vmem:[#allocation6 + $0x100] sm:$0xff]  ;;  %v2208_v10 = vld [vmem:[%s2147_s4 + $0x30] sm:$0xff]  ;;  %v2221_v13 = vld [vmem:[%s2147_s4 + $0x48] sm:$0xff] }
  0x70   : > { %719 = vmatpush.msra.mxu3 %v484_v40  ;;  %588 = vmatpush.msra.mxu1 %v485_v60  ;;  %v2198_v8 = vld [vmem:[%s2147_s4 + $0x20] sm:$0xff]  ;;  %v2228_v14 = vld [vmem:[%s2147_s4 + $0x50] sm:$0xff]  ;;  %v2231_v15 = vld [vmem:[%s2147_s4 + $0x58] sm:$0xff] }
  0x71   : > { %655 = vmatpush.msra.mxu2 %v450_v43  ;;  %525 = vmatpush.msra.mxu0 %v449_v61  ;;  %v2218_v12 = vld [vmem:[%s2147_s4 + $0x40] sm:$0xff]  ;;  %v2239_v17 = vld [vmem:[%s2147_s4 + $0x68] sm:$0xff]  ;;  %v425_v18 = vld [vmem:[%s2147_s4 + $0x70] sm:$0xff] }
  0x72   : > { %720 = vmatpush.msra.mxu3 %v482_v44  ;;  %589 = vmatpush.msra.mxu1 %v483_v62  ;;  %v423_v16 = vld [vmem:[%s2147_s4 + $0x60] sm:$0xff]  ;;  %v426_v19 = vld [vmem:[%s2147_s4 + $0x78] sm:$0xff]  ;;  %v428_v21 = vld [vmem:[%s2147_s4 + $0x88] sm:$0xff] }
  0x73   : > { %656 = vmatpush.msra.mxu2 %v448_v47  ;;  %526 = vmatpush.msra.mxu0 %v447_v63  ;;  %v427_v20 = vld [vmem:[%s2147_s4 + $0x80] sm:$0xff]  ;;  %v429_v22 = vld [vmem:[%s2147_s4 + $0x90] sm:$0xff]  ;;  %v430_v23 = vld [vmem:[%s2147_s4 + $0x98] sm:$0xff] }
  0x74   : > { %721 = vmatpush.msra.mxu3 %v480_v48  ;;  %590 = vmatpush.msra.mxu1 %v481_v0  ;;  %v431_v24 = vld [vmem:[%s2147_s4 + $0xa0] sm:$0xff]  ;;  %v432_v25 = vld [vmem:[%s2147_s4 + $0xa8] sm:$0xff]  ;;  %v2254_v26 = vld [vmem:[%s2147_s4 + $0xf0] sm:$0xff] }
  0x75   : > { %657 = vmatpush.msra.mxu2 %v446_v51  ;;  %527 = vmatpush.msra.mxu0 %v445_v1  ;;  %v439_v27 = vld [vmem:[%s2147_s4 + $0xe0] sm:$0xff]  ;;  %v437_v28 = vld [vmem:[%s2147_s4 + $0xd0] sm:$0xff]  ;;  %v434_v30 = vld [vmem:[%s2147_s4 + $0xb8] sm:$0xff] }
  0x76   : > { %722 = vmatpush.msra.mxu3 %v478_v52  ;;  %591 = vmatpush.msra.mxu1 %v479_v2  ;;  %v433_v29 = vld [vmem:[%s2147_s4 + $0xb0] sm:$0xff]  ;;  %v435_v31 = vld [vmem:[%s2147_s4 + $0xc0] sm:$0xff]  ;;  %v442_v32 = vld [vmem:[%s2147_s4 + $0xf8] sm:$0xff] }
  0x77   : > { %658 = vmatpush.msra.mxu2 %v444_v55  ;;  %528 = vmatpush.msra.mxu0 %v443_v5  ;;  %v440_v33 = vld [vmem:[%s2147_s4 + $0xe8] sm:$0xff]  ;;  %v438_v34 = vld [vmem:[%s2147_s4 + $0xd8] sm:$0xff] }
  0x78   : > { %723 = vmatpush.msra.mxu3 %v476_v56  ;;  %659 = vmatmul.f32.vlgmr.msra.gmra.mxu2 %v2180_v57  ;;  %v436_v35 = vld [vmem:[%s2147_s4 + $0xc8] sm:$0xff]  ;;  %v507_v36 = vld [vmem:[%s2697_s3] sm:$0x3]  ;;  %s1258_s3 = sshll.u32 %s370_s20, 4  ;;  %s1235_s4 = scalar_lea.sflag [#allocation5], %s2143_s2  ;;  %s1259_s3 = int_to_ptr.vmem [resolvable:$true] %s1258_s3 }
  0x79   : > { %724 = vmatmul.f32.vlgmr.msra.gmra.mxu3 %v2183_v58  ;;  %592 = vmatpush.msra.mxu1 %v477_v6  ;;  %v2283_v37 = vperm.slane %v507_v36, 1  ;;  %v2287_v41 = vperm.slane %v507_v36, 0 }
  0x7a   : > { %529 = vmatmul.f32.vlgmr.msra.gmra.mxu0 %v2180_v57  ;;  %1194 = vmatpush.msrb.mxu2 %v442_v32 }
  0x7b   : > { %593 = vmatpush.msra.mxu1 %v475_v7 }
  0x7c   : > { %594 = vmatmul.f32.vlgmr.msra.gmra.mxu1 %v2183_v58  ;;  %1195 = vmatpush.msrb.mxu2 %v440_v33 }
  0x7d   : > { %1174 = vmatpush.msrb.mxu1 %v2254_v26 }
  0x7e   : > { %1196 = vmatpush.msrb.mxu2 %v438_v34 }
  0x7f   : > { %1175 = vmatpush.msrb.mxu1 %v439_v27 }
  0x80   : > { %662 = vmatmul.f32.gmra.mxu2 %v2188_v3 }
  0x81   : > { %727 = vmatmul.f32.gmra.mxu3 %v2191_v4  ;;  %1176 = vmatpush.msrb.mxu1 %v437_v28 }
  0x82   : > { %532 = vmatmul.f32.gmra.mxu0 %v2188_v3  ;;  %1197 = vmatpush.msrb.mxu2 %v436_v35 }
  0x83   : > { %1177 = vmatpush.msrb.mxu1 %v435_v31 }
  0x84   : > { %597 = vmatmul.f32.gmra.mxu1 %v2191_v4  ;;  %1198 = vmatpush.msrb.mxu2 %v434_v30 }
  0x85   : > { %1178 = vmatpush.msrb.mxu1 %v433_v29 }
  0x86   : > { %1199 = vmatpush.msrb.mxu2 %v432_v25 }
  0x87   : > { %1179 = vmatpush.msrb.mxu1 %v431_v24 }
  0x88   : > { %665 = vmatmul.f32.gmra.mxu2 %v2198_v8 }
  0x89   : > { %730 = vmatmul.f32.gmra.mxu3 %v2201_v9  ;;  %1180 = vmatpush.msrb.mxu1 %v429_v22 }
  0x8a   : > { %535 = vmatmul.f32.gmra.mxu0 %v2198_v8  ;;  %1200 = vmatpush.msrb.mxu2 %v430_v23 }
  0x8b   : > { %1181 = vmatpush.msrb.mxu1 %v427_v20 }
  0x8c   : > { %600 = vmatmul.f32.gmra.mxu1 %v2201_v9  ;;  %1201 = vmatpush.msrb.mxu2 %v428_v21 }
  0x8d   : > { %1182 = vmatpush.msrb.mxu1 %v425_v18 }
  0x8e   : > { %1202 = vmatpush.msrb.mxu2 %v426_v19 }
  0x8f   : > { %1183 = vmatpush.msrb.mxu1 %v423_v16 }
  0x90   : > { %668 = vmatmul.f32.gmra.mxu2 %v2208_v10 }
  0x91   : > { %733 = vmatmul.f32.gmra.mxu3 %v2211_v11  ;;  %1184 = vmatpush.msrb.mxu1 %v2228_v14 }
  0x92   : > { %538 = vmatmul.f32.gmra.mxu0 %v2208_v10  ;;  %1203 = vmatpush.msrb.mxu2 %v2239_v17 }
  0x93   : > { %1185 = vmatpush.msrb.mxu1 %v2218_v12 }
  0x94   : > { %603 = vmatmul.f32.gmra.mxu1 %v2211_v11  ;;  %1204 = vmatpush.msrb.mxu2 %v2231_v15 }
  0x95   : > { %1186 = vmatpush.msrb.mxu1 %v2208_v10 }
  0x96   : > { %1205 = vmatpush.msrb.mxu2 %v2221_v13 }
  0x97   : > { %1187 = vmatpush.msrb.mxu1 %v2198_v8 }
  0x98   : > { %671 = vmatmul.f32.gmra.mxu2 %v2218_v12 }
  0x99   : > { %736 = vmatmul.f32.gmra.mxu3 %v2221_v13  ;;  %1188 = vmatpush.msrb.mxu1 %v2188_v3 }
  0x9a   : > { %541 = vmatmul.f32.gmra.mxu0 %v2218_v12  ;;  %1206 = vmatpush.msrb.mxu2 %v2211_v11 }
  0x9b   : > { %1189 = vmatpush.msrb.mxu1 %v2180_v57 }
  0x9c   : > { %606 = vmatmul.f32.gmra.mxu1 %v2221_v13  ;;  %1207 = vmatpush.msrb.mxu2 %v2201_v9 }
  0x9e   : > { %1208 = vmatpush.msrb.mxu2 %v2191_v4 }
  0xa0   : > { %674 = vmatmul.f32.gmra.mxu2 %v2228_v14 }
  0xa1   : > { %739 = vmatmul.f32.gmra.mxu3 %v2231_v15  ;;  %1209 = vmatpush.msrb.mxu2 %v2183_v58 }
  0xa2   : > { %544 = vmatmul.f32.gmra.mxu0 %v2228_v14 }
  0xa4   : > { %609 = vmatmul.f32.gmra.mxu1 %v2231_v15 }
  0xa8   : > { %677 = vmatmul.f32.gmra.mxu2 %v423_v16 }
  0xa9   : > { %742 = vmatmul.f32.gmra.mxu3 %v2239_v17 }
  0xaa   : > { %547 = vmatmul.f32.gmra.mxu0 %v423_v16 }
  0xac   : > { %612 = vmatmul.f32.gmra.mxu1 %v2239_v17 }
  0xb0   : > { %680 = vmatmul.f32.gmra.mxu2 %v425_v18 }
  0xb1   : > { %745 = vmatmul.f32.gmra.mxu3 %v426_v19 }
  0xb2   : > { %550 = vmatmul.f32.gmra.mxu0 %v425_v18 }
  0xb4   : > { %615 = vmatmul.f32.gmra.mxu1 %v426_v19 }
  0xb8   : > { %683 = vmatmul.f32.gmra.mxu2 %v427_v20 }
  0xb9   : > { %748 = vmatmul.f32.gmra.mxu3 %v428_v21 }
  0xba   : > { %553 = vmatmul.f32.gmra.mxu0 %v427_v20 }
  0xbc   : > { %618 = vmatmul.f32.gmra.mxu1 %v428_v21 }
  0xc0   : > { %686 = vmatmul.f32.gmra.mxu2 %v429_v22 }
  0xc1   : > { %751 = vmatmul.f32.gmra.mxu3 %v430_v23 }
  0xc2   : > { %556 = vmatmul.f32.gmra.mxu0 %v429_v22 }
  0xc4   : > { %621 = vmatmul.f32.gmra.mxu1 %v430_v23 }
  0xc8   : > { %689 = vmatmul.f32.gmra.mxu2 %v431_v24 }
  0xc9   : > { %754 = vmatmul.f32.gmra.mxu3 %v432_v25 }
  0xca   : > { %559 = vmatmul.f32.gmra.mxu0 %v431_v24 }
  0xcc   : > { %624 = vmatmul.f32.gmra.mxu1 %v432_v25 }
  0xd0   : > { %692 = vmatmul.f32.gmra.mxu2 %v433_v29 }
  0xd1   : > { %757 = vmatmul.f32.gmra.mxu3 %v434_v30 }
  0xd2   : > { %562 = vmatmul.f32.gmra.mxu0 %v433_v29 }
  0xd4   : > { %627 = vmatmul.f32.gmra.mxu1 %v434_v30 }
  0xd8   : > { %695 = vmatmul.f32.gmra.mxu2 %v435_v31 }
  0xd9   : > { %760 = vmatmul.f32.gmra.mxu3 %v436_v35 }
  0xda   : > { %565 = vmatmul.f32.gmra.mxu0 %v435_v31 }
  0xdc   : > { %630 = vmatmul.f32.gmra.mxu1 %v436_v35 }
  0xe0   : > { %698 = vmatmul.f32.gmra.mxu2 %v437_v28 }
  0xe1   : > { %763 = vmatmul.f32.gmra.mxu3 %v438_v34 }
  0xe2   : > { %568 = vmatmul.f32.gmra.mxu0 %v437_v28 }
  0xe4   : > { %633 = vmatmul.f32.gmra.mxu1 %v438_v34 }
  0xe8   : > { %701 = vmatmul.f32.gmra.mxu2 %v439_v27 }
  0xe9   : > { %766 = vmatmul.f32.gmra.mxu3 %v440_v33 }
  0xea   : > { %571 = vmatmul.f32.gmra.mxu0 %v439_v27 }
  0xec   : > { %636 = vmatmul.f32.gmra.mxu1 %v440_v33 }
  0xf0   : > { %704 = vmatmul.f32.gmra.mxu2 %v2254_v26 }
  0xf1   : > { %769 = vmatmul.f32.gmra.mxu3 %v442_v32 }
  0xf2   : > { %574 = vmatmul.f32.gmra.mxu0 %v2254_v26 }
  0xf4   : > { %639 = vmatmul.f32.gmra.mxu1 %v442_v32 }
  0xf7   : > { %v530_v43 = vpop.f32.mrf.mxu0 }
  0xf8   : > { %v531_v45 = vadd.f32 %v530_v43, %v2287_v41 }
  0xf9   : > { %v595_v46 = vpop.f32.mrf.mxu1 }
  0xfa   : > { %v596_v47 = vadd.f32 %v595_v46, %v531_v45 }
  0xfb   : > { %v660_v38 = vpop.f32.mrf.mxu2 }
  0xfc   : > { %v725_v39 = vpop.f32.mrf.mxu3  ;;  %v661_v40 = vadd.f32 %v660_v38, %v2283_v37 }
  0xfe   : > { %v726_v42 = vadd.f32 %v725_v39, %v661_v40 }
  0xff   : > { %v533_v52 = vpop.f32.mrf.mxu0 }
 0x100   : > { %v1461_v44 = vmul.f32 -1.442695, %v726_v42  ;;  %v534_v55 = vadd.f32 %v533_v52, %v2287_v41 }
 0x101   : > { %v598_v57 = vpop.f32.mrf.mxu1 }
 0x102   : > { %1613 = vpow2.f32 %v1461_v44  ;;  %v599_v58 = vadd.f32 %v598_v57, %v534_v55 }
 0x103   : > { %v663_v48 = vpop.f32.mrf.mxu2 }
 0x104   : > { %v728_v49 = vpop.f32.mrf.mxu3  ;;  %v664_v50 = vadd.f32 %v663_v48, %v2283_v37 }
 0x106   : > { %v729_v51 = vadd.f32 %v728_v49, %v664_v50 }
 0x107   : > { %v536_v63 = vpop.f32.mrf.mxu0 }
 0x108   : > { %v1614_v53 = vpop.eup %1613  ;;  %v1462_v54 = vmul.f32 -1.442695, %v729_v51  ;;  %v537_v2 = vadd.f32 %v536_v63, %v2287_v41 }
 0x109   : > { %v837_v56 = vadd.f32 1.0, %v1614_v53  ;;  %v601_v5 = vpop.f32.mrf.mxu1 }
 0x10a   : > { %1615 = vpow2.f32 %v1462_v54  ;;  %v2296_v6 = vadd.f32 %v601_v5, %v537_v2 }
 0x10b   : > { %1617 = vrcp.f32 %v837_v56  ;;  %v666_v59 = vpop.f32.mrf.mxu2  ;;  %v862_v15 = vand.u32 2147483647, %v837_v56  ;;  %v864_v16 = vand.u32 2147483648, %v837_v56  ;;  %vm858_vm3 = vweird.f32 %v837_v56 }
 0x10c   : > { %v731_v60 = vpop.f32.mrf.mxu3  ;;  %v667_v61 = vadd.f32 %v666_v59, %v2283_v37 }
 0x10d   : > { %v865_v29 = vor.u32 1.1754944e-38, %v864_v16  ;;  %vm863_vm5 = vcmp.eq.f32.partialorder %v862_v15, 8.507059e+37 }
 0x10e   : > { %v732_v62 = vadd.f32 %v731_v60, %v667_v61 }
 0x10f   : > { %v539_v14 = vpop.f32.mrf.mxu0 }
 0x110   : > { %v1616_v0 = vpop.eup %1615  ;;  %v1463_v1 = vmul.f32 -1.442695, %v732_v62  ;;  %v540_v19 = vadd.f32 %v539_v14, %v2287_v41 }
 0x111   : > { %v1618_v3 = vpop.eup %1617  ;;  %v2294_v4 = vadd.f32 1.0, %v1616_v0  ;;  %v604_v23 = vpop.f32.mrf.mxu1 }
 0x112   : > { %1619 = vpow2.f32 %v1463_v1  ;;  %v854_v7 = vmul.f32 %v1618_v3, %v837_v56  ;;  %vm859_vm2 = vweird.f32 %v1618_v3  ;;  %v2303_v24 = vadd.f32 %v604_v23, %v540_v19 }
 0x113   : > { %1621 = vrcp.f32 %v2294_v4  ;;  %v669_v8 = vpop.f32.mrf.mxu2  ;;  %vm860_vm4 = vmor %vm858_vm3, %vm859_vm2  ;;  %v877_v39 = vand.u32 2147483647, %v2294_v4  ;;  %v879_v40 = vand.u32 2147483648, %v2294_v4  ;;  %vm873_vm7 = vweird.f32 %v2294_v4 }
 0x114   : > { %v734_v9 = vpop.f32.mrf.mxu3  ;;  %v670_v10 = vadd.f32 %v669_v8, %v2283_v37  ;;  %v855_v11 = vsub.f32 1.0, %v854_v7  ;;  %1623 = vtanh.f32 %v596_v47 }
 0x115   : > { %v880_v54 = vor.u32 1.1754944e-38, %v879_v40  ;;  %vm878_vm9 = vcmp.eq.f32.partialorder %v877_v39, 8.507059e+37 }
 0x116   : > { %v735_v12 = vadd.f32 %v734_v9, %v670_v10  ;;  %v856_v13 = vmul.f32 %v1618_v3, %v855_v11 }
 0x117   : > { %v542_v38 = vpop.f32.mrf.mxu0 }
 0x118   : > { %v1620_v17 = vpop.eup %1619  ;;  %v1464_v18 = vmul.f32 -1.442695, %v735_v12  ;;  %v857_v20 = vadd.f32 %v1618_v3, %v856_v13  ;;  %v543_v44 = vadd.f32 %v542_v38, %v2287_v41 }
 0x119   : > { %v1622_v21 = vpop.eup %1621  ;;  %v2301_v22 = vadd.f32 1.0, %v1620_v17  ;;  %v607_v48 = vpop.f32.mrf.mxu1 }
 0x11a   : > { %1625 = vpow2.f32 %v1464_v18  ;;  %v869_v25 = vmul.f32 %v1622_v21, %v2294_v4  ;;  %v1624_v26 = vpop.eup %1623  ;;  %v861_v32 = vsel %vm860_vm4, %v1618_v3, %v857_v20  ;;  %vm874_vm6 = vweird.f32 %v1622_v21 }
 0x11b   : > { %1627 = vrcp.f32 %v2301_v22  ;;  %v672_v27 = vpop.f32.mrf.mxu2  ;;  %v866_v33 = vsel %vm863_vm5, %v865_v29, %v861_v32  ;;  %v2315_v49 = vadd.f32 %v607_v48, %v543_v44  ;;  %vm875_vm8 = vmor %vm873_vm7, %vm874_vm6  ;;  %v892_v63 = vand.u32 2147483647, %v2301_v22 }
 0x11c   : > { %v737_v28 = vpop.f32.mrf.mxu3  ;;  %v673_v30 = vadd.f32 %v672_v27, %v2283_v37  ;;  %v870_v31 = vsub.f32 1.0, %v869_v25  ;;  %1629 = vtanh.f32 %v599_v58  ;;  %v2308_v36 = vmul.f32 %v1624_v26, %v866_v33 }
 0x11d   : > { %v894_v0 = vand.u32 2147483648, %v2301_v22  ;;  %vm888_vm11 = vweird.f32 %v2301_v22  ;;  %vm893_vm13 = vcmp.eq.f32.partialorder %v892_v63, 8.507059e+37 }
 0x11e   : > { %v738_v34 = vadd.f32 %v737_v28, %v673_v30  ;;  %v871_v35 = vmul.f32 %v1622_v21, %v870_v31 }
 0x11f   : > { %v545_v62 = vpop.f32.mrf.mxu0  ;;  %v895_v13 = vor.u32 1.1754944e-38, %v894_v0 }
 0x120   : > { %v1626_v42 = vpop.eup %1625  ;;  %v1465_v43 = vmul.f32 -1.442695, %v738_v34  ;;  %v872_v45 = vadd.f32 %v1622_v21, %v871_v35  ;;  %v546_v3 = vadd.f32 %v545_v62, %v2287_v41 }
 0x121   : > { %v1628_v46 = vpop.eup %1627  ;;  %v2313_v47 = vadd.f32 1.0, %v1626_v42 }
 0x122   : > { %1631 = vpow2.f32 %v1465_v43  ;;  %v884_v50 = vmul.f32 %v1628_v46, %v2301_v22  ;;  %v1630_v51 = vpop.eup %1629  ;;  %v876_v57 = vsel %vm875_vm8, %v1622_v21, %v872_v45  ;;  %vm889_vm10 = vweird.f32 %v1628_v46 }
 0x123   : > { %1633 = vrcp.f32 %v2313_v47  ;;  %v675_v52 = vpop.f32.mrf.mxu2  ;;  %v881_v58 = vsel %vm878_vm9, %v880_v54, %v876_v57  ;;  %vm890_vm12 = vmor %vm888_vm11, %vm889_vm10  ;;  %v907_v22 = vand.u32 2147483647, %v2313_v47  ;;  %v909_v23 = vand.u32 2147483648, %v2313_v47 }
 0x124   : > { %v740_v53 = vpop.f32.mrf.mxu3  ;;  %v676_v55 = vadd.f32 %v675_v52, %v2283_v37  ;;  %v885_v56 = vsub.f32 1.0, %v884_v50  ;;  %1635 = vtanh.f32 %v2296_v6  ;;  %v2322_v61 = vmul.f32 %v1630_v51, %v881_v58  ;;  %v610_v6 = vpop.f32.mrf.mxu1 }
 0x125   : > { %v2329_v8 = vadd.f32 %v610_v6, %v546_v3  ;;  %vm903_vm15 = vweird.f32 %v2313_v47  ;;  %v910_v38 = vor.u32 1.1754944e-38, %v909_v23  ;;  %vm908_vm1 = vcmp.eq.f32.partialorder %v907_v22, 8.507059e+37 }
 0x126   : > { %v741_v59 = vadd.f32 %v740_v53, %v676_v55  ;;  %v886_v60 = vmul.f32 %v1628_v46, %v885_v56 }
 0x127   : > { %v548_v21 = vpop.f32.mrf.mxu0 }
 0x128   : > { %v1632_v1 = vpop.eup %1631  ;;  %v1466_v2 = vmul.f32 -1.442695, %v741_v59  ;;  %v887_v4 = vadd.f32 %v1628_v46, %v886_v60  ;;  %v549_v27 = vadd.f32 %v548_v21, %v2287_v41 }
 0x129   : > { %v1634_v5 = vpop.eup %1633  ;;  %v2327_v7 = vadd.f32 1.0, %v1632_v1 }
 0x12a   : > { %1637 = vpow2.f32 %v1466_v2  ;;  %v899_v9 = vmul.f32 %v1634_v5, %v2313_v47  ;;  %v1636_v10 = vpop.eup %1635  ;;  %v891_v16 = vsel %vm890_vm12, %v1628_v46, %v887_v4  ;;  %vm904_vm14 = vweird.f32 %v1634_v5 }
 0x12b   : > { %1639 = vrcp.f32 %v2327_v7  ;;  %v678_v11 = vpop.f32.mrf.mxu2  ;;  %v896_v17 = vsel %vm893_vm13, %v895_v13, %v891_v16  ;;  %vm905_vm0 = vmor %vm903_vm15, %vm904_vm14  ;;  %v922_v48 = vand.u32 2147483647, %v2327_v7  ;;  %v924_v50 = vand.u32 2147483648, %v2327_v7 }
 0x12c   : > { %v743_v12 = vpop.f32.mrf.mxu3  ;;  %v679_v14 = vadd.f32 %v678_v11, %v2283_v37  ;;  %v900_v15 = vsub.f32 1.0, %v899_v9  ;;  %1641 = vtanh.f32 %v2303_v24  ;;  %v2336_v20 = vmul.f32 %v1636_v10, %v896_v17  ;;  %v613_v24 = vpop.f32.mrf.mxu1 }
 0x12d   : > { %v2343_v31 = vadd.f32 %v613_v24, %v549_v27  ;;  %vm918_vm3 = vweird.f32 %v2327_v7  ;;  %v925_v63 = vor.u32 1.1754944e-38, %v924_v50  ;;  %vm923_vm5 = vcmp.eq.f32.partialorder %v922_v48, 8.507059e+37 }
 0x12e   : > { %v744_v18 = vadd.f32 %v743_v12, %v679_v14  ;;  %v901_v19 = vmul.f32 %v1634_v5, %v900_v15 }
 0x12f   : > { %v551_v47 = vpop.f32.mrf.mxu0 }
 0x130   : > { %v1638_v25 = vpop.eup %1637  ;;  %v1467_v26 = vmul.f32 -1.442695, %v744_v18  ;;  %v902_v28 = vadd.f32 %v1634_v5, %v901_v19  ;;  %v552_v53 = vadd.f32 %v551_v47, %v2287_v41 }
 0x131   : > { %v1640_v29 = vpop.eup %1639  ;;  %v2341_v30 = vadd.f32 1.0, %v1638_v25 }
 0x132   : > { %1643 = vpow2.f32 %v1467_v26  ;;  %v914_v32 = vmul.f32 %v1640_v29, %v2327_v7  ;;  %v1642_v33 = vpop.eup %1641  ;;  %v906_v42 = vsel %vm905_vm0, %v1634_v5, %v902_v28  ;;  %vm919_vm2 = vweird.f32 %v1640_v29 }
 0x133   : > { %1645 = vrcp.f32 %v2341_v30  ;;  %v681_v34 = vpop.f32.mrf.mxu2  ;;  %v911_v43 = vsel %vm908_vm1, %v910_v38, %v906_v42  ;;  %vm920_vm4 = vmor %vm918_vm3, %vm919_vm2  ;;  %v937_v9 = vand.u32 2147483647, %v2341_v30  ;;  %v939_v10 = vand.u32 2147483648, %v2341_v30 }
 0x134   : > { %v746_v35 = vpop.f32.mrf.mxu3  ;;  %v682_v39 = vadd.f32 %v681_v34, %v2283_v37  ;;  %v915_v40 = vsub.f32 1.0, %v914_v32  ;;  %1647 = vtanh.f32 %v2315_v49  ;;  %v2350_v46 = vmul.f32 %v1642_v33, %v911_v43  ;;  %v616_v49 = vpop.f32.mrf.mxu1 }
 0x135   : > { %v2357_v57 = vadd.f32 %v616_v49, %v552_v53  ;;  %vm933_vm7 = vweird.f32 %v2341_v30  ;;  %v940_v23 = vor.u32 1.1754944e-38, %v939_v10  ;;  %vm938_vm9 = vcmp.eq.f32.partialorder %v937_v9, 8.507059e+37 }
 0x136   : > { %v747_v44 = vadd.f32 %v746_v35, %v682_v39  ;;  %v916_v45 = vmul.f32 %v1640_v29, %v915_v40 }
 0x137   : > { %v554_v7 = vpop.f32.mrf.mxu0 }
 0x138   : > { %v1644_v51 = vpop.eup %1643  ;;  %v1468_v52 = vmul.f32 -1.442695, %v747_v44  ;;  %v917_v54 = vadd.f32 %v1640_v29, %v916_v45  ;;  %v555_v13 = vadd.f32 %v554_v7, %v2287_v41 }
 0x139   : > { %v1646_v55 = vpop.eup %1645  ;;  %v2355_v56 = vadd.f32 1.0, %v1644_v51 }
 0x13a   : > { %1649 = vpow2.f32 %v1468_v52  ;;  %v929_v58 = vmul.f32 %v1646_v55, %v2341_v30  ;;  %v1648_v59 = vpop.eup %1647  ;;  %v921_v2 = vsel %vm920_vm4, %v1640_v29, %v917_v54  ;;  %vm934_vm6 = vweird.f32 %v1646_v55 }
 0x13b   : > { %1651 = vrcp.f32 %v2355_v56  ;;  %v684_v60 = vpop.f32.mrf.mxu2  ;;  %v926_v3 = vsel %vm923_vm5, %v925_v63, %v921_v2  ;;  %vm935_vm8 = vmor %vm933_vm7, %vm934_vm6  ;;  %v952_v33 = vand.u32 2147483647, %v2355_v56  ;;  %v954_v34 = vand.u32 2147483648, %v2355_v56 }
 0x13c   : > { %v749_v62 = vpop.f32.mrf.mxu3  ;;  %v685_v0 = vadd.f32 %v684_v60, %v2283_v37  ;;  %v930_v1 = vsub.f32 1.0, %v929_v58  ;;  %1653 = vtanh.f32 %v2329_v8  ;;  %v2364_v6 = vmul.f32 %v1648_v59, %v926_v3  ;;  %v619_v8 = vpop.f32.mrf.mxu1 }
 0x13d   : > { %v2371_v17 = vadd.f32 %v619_v8, %v555_v13  ;;  %vm948_vm11 = vweird.f32 %v2355_v56  ;;  %v955_v51 = vor.u32 1.1754944e-38, %v954_v34  ;;  %vm953_vm13 = vcmp.eq.f32.partialorder %v952_v33, 8.507059e+37 }
 0x13e   : > { %v750_v4 = vadd.f32 %v749_v62, %v685_v0  ;;  %v931_v5 = vmul.f32 %v1646_v55, %v930_v1 }
 0x13f   : > { %v557_v30 = vpop.f32.mrf.mxu0 }
 0x140   : > { %v1650_v11 = vpop.eup %1649  ;;  %v1469_v12 = vmul.f32 -1.442695, %v750_v4  ;;  %v932_v14 = vadd.f32 %v1646_v55, %v931_v5  ;;  %v558_v39 = vadd.f32 %v557_v30, %v2287_v41 }
 0x141   : > { %v1652_v15 = vpop.eup %1651  ;;  %v2369_v16 = vadd.f32 1.0, %v1650_v11 }
 0x142   : > { %1655 = vpow2.f32 %v1469_v12  ;;  %v944_v18 = vmul.f32 %v1652_v15, %v2355_v56  ;;  %v1654_v19 = vpop.eup %1653  ;;  %v936_v27 = vsel %vm935_vm8, %v1646_v55, %v932_v14  ;;  %vm949_vm10 = vweird.f32 %v1652_v15 }
 0x143   : > { %1657 = vrcp.f32 %v2369_v16  ;;  %v687_v21 = vpop.f32.mrf.mxu2  ;;  %v941_v28 = vsel %vm938_vm9, %v940_v23, %v936_v27  ;;  %vm950_vm12 = vmor %vm948_vm11, %vm949_vm10  ;;  %v969_v56 = vand.u32 2147483648, %v2369_v16  ;;  %v967_v62 = vand.u32 2147483647, %v2369_v16 }
 0x144   : > { %v752_v22 = vpop.f32.mrf.mxu3  ;;  %v688_v25 = vadd.f32 %v687_v21, %v2283_v37  ;;  %v945_v26 = vsub.f32 1.0, %v944_v18  ;;  %1659 = vtanh.f32 %v2343_v31  ;;  %v2378_v32 = vmul.f32 %v1654_v19, %v941_v28  ;;  %v622_v44 = vpop.f32.mrf.mxu1 }
 0x145   : > { %v623_v31 = vadd.f32 %v622_v44, %v558_v39  ;;  %vm963_vm15 = vweird.f32 %v2369_v16  ;;  %v970_v5 = vor.u32 1.1754944e-38, %v969_v56  ;;  %vm968_vm1 = vcmp.eq.f32.partialorder %v967_v62, 8.507059e+37 }
 0x146   : > { %v753_v29 = vadd.f32 %v752_v22, %v688_v25  ;;  %v946_v24 = vmul.f32 %v1652_v15, %v945_v26 }
 0x147   : > { %v2392_v58 = vpop.f32.mrf.mxu0 }
 0x148   : > { %v1656_v35 = vpop.eup %1655  ;;  %v1470_v38 = vmul.f32 -1.442695, %v753_v29  ;;  %v947_v40 = vadd.f32 %v1652_v15, %v946_v24 }
 0x149   : > { %v1658_v42 = vpop.eup %1657  ;;  %v845_v43 = vadd.f32 1.0, %v1656_v35 }
 0x14a   : > { %1661 = vpow2.f32 %v1470_v38  ;;  %v959_v45 = vmul.f32 %v1658_v42, %v2369_v16  ;;  %v1660_v47 = vpop.eup %1659  ;;  %v951_v53 = vsel %vm950_vm12, %v1652_v15, %v947_v40  ;;  %vm964_vm14 = vweird.f32 %v1658_v42 }
 0x14b   : > { %1663 = vrcp.f32 %v845_v43  ;;  %v2385_v48 = vpop.f32.mrf.mxu2  ;;  %v956_v54 = vsel %vm953_vm13, %v955_v51, %v951_v53  ;;  %vm965_vm0 = vmor %vm963_vm15, %vm964_vm14  ;;  %v984_v13 = vand.u32 2147483648, %v845_v43  ;;  %v982_v16 = vand.u32 2147483647, %v845_v43 }
 0x14c   : > { %v2387_v50 = vpop.f32.mrf.mxu3  ;;  %v960_v52 = vsub.f32 1.0, %v959_v45  ;;  %1665 = vtanh.f32 %v2357_v57  ;;  %v2390_v49 = vmul.f32 %v1660_v47, %v956_v54  ;;  %v2396_v1 = vpop.f32.mrf.mxu1  ;;  %vm978_vm3 = vweird.f32 %v845_v43 }
 0x14d   : > { %v985_v23 = vor.u32 1.1754944e-38, %v984_v13  ;;  %vm983_vm5 = vcmp.eq.f32.partialorder %v982_v16, 8.507059e+37  ;;  %v691_v62 = vadd.f32 %v2385_v48, %v2283_v37 }
 0x14e   : > { %v961_v55 = vmul.f32 %v1658_v42, %v960_v52 }
 0x14f   : > { %v2402_v14 = vpop.f32.mrf.mxu0 }
 0x150   : > { %v1662_v59 = vpop.eup %1661  ;;  %v962_v60 = vadd.f32 %v1658_v42, %v961_v55 }
 0x151   : > { %v1664_v63 = vpop.eup %1663  ;;  %v846_v0 = vadd.f32 1.0, %v1662_v59 }
 0x152   : > { %v974_v2 = vmul.f32 %v1664_v63, %v845_v43  ;;  %v1666_v57 = vpop.eup %1665  ;;  %v966_v9 = vsel %vm965_vm0, %v1658_v42, %v962_v60  ;;  %vm979_vm2 = vweird.f32 %v1664_v63 }
 0x153   : > { %1667 = vrcp.f32 %v846_v0  ;;  %v693_v3 = vpop.f32.mrf.mxu2  ;;  %v971_v10 = vsel %vm968_vm1, %v970_v5, %v966_v9  ;;  %vm980_vm4 = vmor %vm978_vm3, %vm979_vm2  ;;  %v999_v24 = vand.u32 2147483648, %v846_v0  ;;  %v997_v33 = vand.u32 2147483647, %v846_v0 }
 0x154   : > { %v758_v4 = vpop.f32.mrf.mxu3  ;;  %v975_v7 = vsub.f32 1.0, %v974_v2  ;;  %1669 = vtanh.f32 %v2371_v17  ;;  %v2400_v12 = vmul.f32 %v1666_v57, %v971_v10  ;;  %v2404_v25 = vpop.f32.mrf.mxu1  ;;  %vm993_vm7 = vweird.f32 %v846_v0 }
 0x155   : > { %1671 = vtanh.f32 %v623_v31  ;;  %v1000_v40 = vor.u32 1.1754944e-38, %v999_v24  ;;  %vm998_vm9 = vcmp.eq.f32.partialorder %v997_v33, 8.507059e+37  ;;  %v694_v52 = vadd.f32 %v693_v3, %v2283_v37 }
 0x156   : > { %v976_v11 = vmul.f32 %v1664_v63, %v975_v7  ;;  %v756_v7 = vadd.f32 %v2387_v50, %v691_v62 }
 0x157   : > { %v2408_v34 = vpop.f32.mrf.mxu0 }
 0x158   : > { %v977_v15 = vadd.f32 %v1664_v63, %v976_v11 }
 0x159   : > { %v1668_v8 = vpop.eup %1667 }
 0x15a   : > { %v989_v18 = vmul.f32 %v1668_v8, %v846_v0  ;;  %v1670_v19 = vpop.eup %1669  ;;  %v981_v26 = vsel %vm980_vm4, %v1664_v63, %v977_v15  ;;  %vm994_vm6 = vweird.f32 %v1668_v8  ;;  %v759_v63 = vadd.f32 %v758_v4, %v694_v52 }
 0x15b   : > { %v696_v21 = vpop.f32.mrf.mxu2  ;;  %v986_v27 = vsel %vm983_vm5, %v985_v23, %v981_v26  ;;  %v1672_v35 = vpop.eup %1671  ;;  %vm995_vm8 = vmor %vm993_vm7, %vm994_vm6  ;;  %v1471_v15 = vmul.f32 -1.442695, %v756_v7  ;;  %v567_v52 = vadd.f32 %v2408_v34, %v2287_v41 }
 0x15c   : > { %v761_v22 = vpop.f32.mrf.mxu3  ;;  %v990_v17 = vsub.f32 1.0, %v989_v18  ;;  %v2406_v29 = vmul.f32 %v1670_v19, %v986_v27  ;;  %v2411_v31 = vpop.f32.mrf.mxu1  ;;  %v697_v47 = vadd.f32 %v696_v21, %v2283_v37  ;;  %v1472_v3 = vmul.f32 -1.442695, %v759_v63 }
 0x15e   : > { %v991_v28 = vmul.f32 %v1668_v8, %v990_v17  ;;  %v762_v53 = vadd.f32 %v761_v22, %v697_v47 }
 0x15f   : > { %v569_v60 = vpop.f32.mrf.mxu0 }
 0x160   : > { %v992_v30 = vadd.f32 %v1668_v8, %v991_v28  ;;  %v1473_v2 = vmul.f32 -1.442695, %v762_v53  ;;  %v570_v62 = vadd.f32 %v569_v60, %v2287_v41 }
 0x162   : > { %v996_v43 = vsel %vm995_vm8, %v1668_v8, %v992_v30 }
 0x163   : > { %v699_v38 = vpop.f32.mrf.mxu2  ;;  %v1001_v44 = vsel %vm998_vm9, %v1000_v40, %v996_v43 }
 0x164   : > { %v764_v39 = vpop.f32.mrf.mxu3  ;;  %v700_v42 = vadd.f32 %v699_v38, %v2283_v37  ;;  %v2413_v45 = vmul.f32 %v1672_v35, %v1001_v44  ;;  %v2420_v5 = vpop.f32.mrf.mxu1 }
 0x166   : > { %v765_v51 = vadd.f32 %v764_v39, %v700_v42 }
 0x167   : > { %v572_v4 = vpop.f32.mrf.mxu0 }
 0x168   : > { %v1474_v54 = vmul.f32 -1.442695, %v765_v51  ;;  %v573_v44 = vadd.f32 %v572_v4, %v2287_v41 }
 0x16a   : > { %1673 = vpow2.f32 %v1474_v54 }
 0x16b   : > { %v702_v55 = vpop.f32.mrf.mxu2 }
 0x16c   : > { %v767_v56 = vpop.f32.mrf.mxu3  ;;  %v703_v59 = vadd.f32 %v702_v55, %v2283_v37  ;;  %v637_v50 = vpop.f32.mrf.mxu1 }
 0x16d   : > { %v638_v63 = vadd.f32 %v637_v50, %v573_v44 }
 0x16e   : > { %v768_v0 = vadd.f32 %v767_v56, %v703_v59 }
 0x16f   : > { %v575_v27 = vpop.f32.mrf.mxu0 }
 0x170   : > { %v1475_v57 = vmul.f32 -1.442695, %v768_v0  ;;  %v1674_v13 = vpop.eup %1673  ;;  %v576_v38 = vadd.f32 %v575_v27, %v2287_v41  ;;  %v564_v0 = vadd.f32 %v2402_v14, %v2287_v41  ;;  %v635_v14 = vadd.f32 %v2420_v5, %v570_v62 }
 0x171   : > { %v2424_v8 = vadd.f32 1.0, %v1674_v13 }
 0x172   : > { %1675 = vpow2.f32 %v1475_v57 }
 0x173   : > { %1677 = vpow2.f32 %v1473_v2  ;;  %v705_v9 = vpop.f32.mrf.mxu2  ;;  %v632_v2 = vadd.f32 %v2411_v31, %v567_v52  ;;  %vm1053_vm3 = vweird.f32 %v2424_v8 }
 0x174   : > { %v770_v10 = vpop.f32.mrf.mxu3  ;;  %v706_v11 = vadd.f32 %v705_v9, %v2283_v37  ;;  %1679 = vpow2.f32 %v1472_v3  ;;  %v640_v39 = vpop.f32.mrf.mxu1 }
 0x175   : > { %1681 = vpow2.f32 %v1471_v15  ;;  %v641_v47 = vadd.f32 %v640_v39, %v576_v38  ;;  %v1057_v38 = vand.u32 2147483647, %v2424_v8 }
 0x176   : > { %v771_v48 = vadd.f32 %v770_v10, %v706_v11 }
 0x177   : > { %vm1058_vm6 = vcmp.eq.f32.partialorder %v1057_v38, 8.507059e+37 }
 0x178   : > { %v1676_v16 = vpop.eup %1675  ;;  %v1476_v18 = vmul.f32 -1.442695, %v771_v48 }
 0x179   : > { %v1678_v19 = vpop.eup %1677  ;;  %v2426_v21 = vadd.f32 1.0, %v1676_v16 }
 0x17a   : > { %1683 = vpow2.f32 %v1476_v18  ;;  %v1680_v22 = vpop.eup %1679  ;;  %v2429_v23 = vadd.f32 1.0, %v1678_v19 }
 0x17b   : > { %1685 = vrcp.f32 %v2426_v21  ;;  %v2432_v37 = vadd.f32 1.0, %v1680_v22  ;;  %v1682_v17 = vpop.eup %1681  ;;  %vm1068_vm12 = vweird.f32 %v2426_v21  ;;  %v1074_v31 = vand.u32 2147483648, %v2426_v21 }
 0x17c   : > { %1687 = vrcp.f32 %v2424_v8  ;;  %v2442_v35 = vadd.f32 1.0, %v1682_v17  ;;  %v1072_v4 = vand.u32 2147483647, %v2426_v21  ;;  %vm1038_vm7 = vweird.f32 %v2429_v23 }
 0x17d   : > { %1689 = vrcp.f32 %v2429_v23  ;;  %v1075_v27 = vor.u32 1.1754944e-38, %v1074_v31 }
 0x17e   : > { %1691 = vrcp.f32 %v2432_v37  ;;  %vm1073_vm2 = vcmp.eq.f32.partialorder %v1072_v4, 8.507059e+37 }
 0x180   : > { %v1684_v26 = vpop.eup %1683 }
 0x181   : > { %v2435_v28 = vpop.eup %1685  ;;  %v852_v24 = vadd.f32 1.0, %v1684_v26 }
 0x182   : > { %v2437_v30 = vpop.eup %1687  ;;  %v1064_v33 = vmul.f32 %v2435_v28, %v2426_v21  ;;  %vm1069_vm10 = vweird.f32 %v2435_v28 }
 0x183   : > { %1693 = vrcp.f32 %v852_v24  ;;  %v1049_v40 = vmul.f32 %v2437_v30, %v2424_v8  ;;  %v2447_v42 = vpop.eup %1689  ;;  %v1089_v3 = vand.u32 2147483648, %v852_v24  ;;  %v1087_v11 = vand.u32 2147483647, %v852_v24  ;;  %vm2472_vm14 = vmor %vm1068_vm12, %vm1069_vm10 }
 0x184   : > { %v1065_v43 = vsub.f32 1.0, %v1064_v33  ;;  %1695 = vrcp.f32 %v2442_v35  ;;  %v2451_v51 = vpop.eup %1691  ;;  %v1034_v55 = vmul.f32 %v2447_v42, %v2429_v23  ;;  %vm1083_vm13 = vweird.f32 %v852_v24 }
 0x185   : > { %v1050_v54 = vsub.f32 1.0, %v1049_v40  ;;  %1697 = vtanh.f32 %v641_v47  ;;  %v1019_v34 = vmul.f32 %v2451_v51, %v2432_v37  ;;  %v1090_v19 = vor.u32 1.1754944e-38, %v1089_v3 }
 0x186   : > { %v1066_v59 = vmul.f32 %v2435_v28, %v1065_v43  ;;  %v1035_v10 = vsub.f32 1.0, %v1034_v55  ;;  %1699 = vtanh.f32 %v638_v63  ;;  %vm1054_vm0 = vweird.f32 %v2437_v30 }
 0x187   : > { %v1051_v9 = vmul.f32 %v2437_v30, %v1050_v54  ;;  %v1020_v50 = vsub.f32 1.0, %v1019_v34  ;;  %vm1088_vm1 = vcmp.eq.f32.partialorder %v1087_v11, 8.507059e+37  ;;  %1701 = vtanh.f32 %v635_v14  ;;  %vm2492_vm4 = vmor %vm1053_vm3, %vm1054_vm0 }
 0x188   : > { %v1067_v13 = vadd.f32 %v2435_v28, %v1066_v59  ;;  %v1036_v5 = vmul.f32 %v2447_v42, %v1035_v10  ;;  %v561_v40 = vadd.f32 %v2392_v58, %v2287_v41  ;;  %vm1039_vm5 = vweird.f32 %v2447_v42 }
 0x189   : > { %v1694_v53 = vpop.eup %1693  ;;  %v1052_v26 = vadd.f32 %v2437_v30, %v1051_v9  ;;  %v629_v41 = vadd.f32 %v2404_v25, %v564_v0  ;;  %1703 = vtanh.f32 %v632_v2  ;;  %v1042_v55 = vand.u32 2147483647, %v2429_v23  ;;  %vm2506_vm8 = vmor %vm1038_vm7, %vm1039_vm5 }
 0x18a   : > { %v1079_v56 = vmul.f32 %v1694_v53, %v852_v24  ;;  %v2464_v7 = vpop.eup %1695  ;;  %vm1084_vm11 = vweird.f32 %v1694_v53  ;;  %v1071_v17 = vsel %vm2472_vm14, %v2435_v28, %v1067_v13  ;;  %v1059_v24 = vand.u32 2147483648, %v2424_v8 }
 0x18b   : > { %v1004_v16 = vmul.f32 %v2464_v7, %v2442_v35  ;;  %v1698_v18 = vpop.eup %1697  ;;  %vm1085_vm15 = vmor %vm1083_vm13, %vm1084_vm11  ;;  %v1076_v43 = vsel %vm1073_vm2, %v1075_v27, %v1071_v17  ;;  %v1056_v47 = vsel %vm2492_vm4, %v2437_v30, %v1052_v26  ;;  %v1037_v52 = vadd.f32 %v2447_v42, %v1036_v5 }
 0x18c   : > { %v1080_v57 = vsub.f32 1.0, %v1079_v56  ;;  %v1700_v39 = vpop.eup %1699  ;;  %v1021_v8 = vmul.f32 %v2451_v51, %v1020_v50  ;;  %v1060_v58 = vor.u32 1.1754944e-38, %v1059_v24  ;;  %vm1024_vm9 = vweird.f32 %v2451_v51 }
 0x18d   : > { %v1005_v44 = vsub.f32 1.0, %v1004_v16  ;;  %v1107_v54 = vmul.f32 %v1700_v39, %v1076_v43  ;;  %v1702_v56 = vpop.eup %1701  ;;  %v1041_v25 = vsel %vm2506_vm8, %v2447_v42, %v1037_v52  ;;  %v626_v0 = vadd.f32 %v2396_v1, %v561_v40 }
 0x18e   : > { %v1081_v60 = vmul.f32 %v1694_v53, %v1080_v57  ;;  %v1061_v30 = vsel %vm1058_vm6, %v1060_v58, %v1056_v47  ;;  %v1022_v62 = vadd.f32 %v2451_v51, %v1021_v8  ;;  %1705 = vtanh.f32 %v629_v41 }
 0x18f   : > { %v1006_v63 = vmul.f32 %v2464_v7, %v1005_v44  ;;  %v1029_v2 = vand.u32 2147483648, %v2432_v37  ;;  %v1106_v57 = vmul.f32 %v1702_v56, %v1061_v30  ;;  %vm1043_vm10 = vcmp.eq.f32.partialorder %v1042_v55, 8.507059e+37  ;;  %v1704_v3 = vpop.eup %1703 }
 0x190   : > { %v1082_v15 = vadd.f32 %v1694_v53, %v1081_v60  ;;  %vm1023_vm11 = vweird.f32 %v2432_v37  ;;  %v1027_v34 = vand.u32 2147483647, %v2432_v37  ;;  %vm1009_vm13 = vweird.f32 %v2464_v7 }
 0x191   : > { %vm1025_vm12 = vmor %vm1023_vm11, %vm1024_vm9  ;;  %v1007_v10 = vadd.f32 %v2464_v7, %v1006_v63  ;;  %1707 = vtanh.f32 %v626_v0  ;;  %v1030_v1 = vor.u32 1.1754944e-38, %v1029_v2  ;;  %v1014_v60 = vand.u32 2147483648, %v2442_v35 }
 0x192   : > { %v1086_v22 = vsel %vm1085_vm15, %v1694_v53, %v1082_v15  ;;  %v1044_v53 = vand.u32 2147483648, %v2429_v23  ;;  %v1026_v9 = vsel %vm1025_vm12, %v2451_v51, %v1022_v62  ;;  %vm1028_vm14 = vcmp.eq.f32.partialorder %v1027_v34, 8.507059e+37 }
 0x193   : > { %v1091_v21 = vsel %vm1088_vm1, %v1090_v19, %v1086_v22  ;;  %vm1008_vm15 = vweird.f32 %v2442_v35  ;;  %v1012_v37 = vand.u32 2147483647, %v2442_v35  ;;  %v1031_v14 = vsel %vm1028_vm14, %v1030_v1, %v1026_v9  ;;  %v1110_v35 = vld [vmem:[#allocation2] sm:$0x1] }
 0x194   : > { %v1108_v33 = vmul.f32 %v1698_v18, %v1091_v21  ;;  %v1045_v23 = vor.u32 1.1754944e-38, %v1044_v53  ;;  %v1706_v13 = vpop.eup %1705  ;;  %vm1010_vm0 = vmor %vm1008_vm15, %vm1009_vm13  ;;  %v1015_v31 = vor.u32 1.1754944e-38, %v1014_v60  ;;  %v1938_v18 = vmov 0   ;;  %v1147_v19 = vld [vmem:[%s2165_s21] sm:$0x1] }
 0x195   : > { %v1011_v51 = vsel %vm1010_vm0, %v2464_v7, %v1007_v10  ;;  %v1104_v15 = vmul.f32 %v1706_v13, %v1031_v14  ;;  %vm1013_vm1 = vcmp.eq.f32.partialorder %v1012_v37, 8.507059e+37  ;;  %1611 = vset.pattern.permute.xlu0 %v1938_v18  ;;  %1612 = vset.pattern.permute.xlu1 %v1938_v18  ;;  %vm1148_vm3 = vcmask 1040384  }
 0x196   : > { %1117 = vmatpush.xpose.msrb.mxu0 %v1108_v33  ;;  %v1046_v42 = vsel %vm1043_vm10, %v1045_v23, %v1041_v25  ;;  %v1016_v4 = vsel %vm1013_vm1, %v1015_v31, %v1011_v51  ;;  %1113 = vperm.xlu0 %1611, %v1110_v35   ;;  %vm1172_vm4 = vcmask 0  }
 0x197   : > { %v1105_v11 = vmul.f32 %v1704_v3, %v1046_v42  ;;  %v1708_v48 = vpop.eup %1707 }
 0x198   : > { %v1103_v16 = vmul.f32 %v1708_v48, %v1016_v4 }
 0x19a   : > { %1118 = vmatpush.xpose.msrb.mxu0 %v1107_v54 }
 0x19e   : > { %1119 = vmatpush.xpose.msrb.mxu0 %v1106_v57 }
 0x1a2   : > { %1120 = vmatpush.xpose.msrb.mxu0 %v1105_v11 }
 0x1a6   : > { %1121 = vmatpush.xpose.msrb.mxu0 %v1104_v15 }
 0x1aa   : > { %1122 = vmatpush.xpose.msrb.mxu0 %v1103_v16 }
 0x1ae   : > { %1123 = vmatpush.xpose.msrb.mxu0 %v2413_v45 }
 0x1b2   : > { %1124 = vmatpush.xpose.msrb.mxu0 %v2406_v29 }
 0x1b6   : > { %1125 = vmatpush.xpose.msrb.mxu0 %v2400_v12  ;;  %v1109_v12 = vld [vmem:[%s2705_s24] sm:$0x1]  ;;  %s1789_s24 = scalar_lea.hbm %s1788_s22, 1 }
 0x1b7   : > { %p1790_p4 = scmp.ne.s32.totalorder %s1788_s22, %s1789_s24  ;;  %p1795_p0 = scmp.lt.s32.totalorder %s1793_s28, %s1789_s24 }
 0x1b9   : > { %p1791_p7 = pnand %p1790_p4, %p2107_p11  ;;  %p1796_p2 = por %p1795_p0, %p1794_p13 }
 0x1ba   : > { %1126 = vmatpush.xpose.msrb.mxu0 %v2390_v49 }
 0x1bb   : > { %p1792_p9 = pneg %p1791_p7 }
 0x1bd   : > { %p1797_p3 = pnand %p1796_p2, %p1792_p9 }
 0x1be   : > { %1127 = vmatpush.xpose.msrb.mxu0 %v2378_v32 }
 0x1c2   : > { %1128 = vmatpush.xpose.msrb.mxu0 %v2364_v6  ;;  %v1140_v6 = vlaneseq }
 0x1c6   : > { %1129 = vmatpush.xpose.msrb.mxu0 %v2350_v46  ;;  %v1142_v46 = vstv %s1478_s27 }
 0x1ca   : > { %1130 = vmatpush.xpose.msrb.mxu0 %v2336_v20  ;;  %v1141_v20 = vand.u32 127, %v1140_v6 }
 0x1ce   : > { %1131 = vmatpush.xpose.msrb.mxu0 %v2322_v61 }
 0x1d2   : > { %1132 = vmatpush.xpose.msrb.mxu0 %v2308_v36  ;;  %v1143_v36 = vadd.s32 %v1142_v46, %v1141_v20 }
 0x1d4   : > { %vm1144_vm2 = vcmp.lt.s32.totalorder %v1143_v36, 300 }
 0x1d5   : > { %1133 = vmatmul.f32.vlgmr.msrb.gmra.mxu0 %v1109_v12 }
 0x208   : > { %v1114_v61 = vpop.permute.xlu0 %1113 }
 0x209   : > { %v1116_v32 = vperm.slane %v1114_v61, 0 }
 0x252   : > { %v1134_v49 = vpop.f32.mrf.mxu0 }
 0x253   : > { %v1135_v29 = vadd.f32 %v1134_v49, %v1116_v32 }
 0x255   : > { %v1145_v45 = vsel %vm1144_vm2, %v1135_v29, -1e+30 }
 0x256   : > { %1146 = vst [vmem:[%s370_s20] sm:$0x1] %v1145_v45  ;;  %v1149_v7 = vsel %vm1148_vm3, %v1145_v45, -inf }
 0x257   : > { %1150 = vmax.xlane.f32.xlu0 %v1149_v7 }
 0x2ca   : > { %v1151_v5 = vpop.xlane.xlu0 %1150 }
 0x2cb   : > { %v1152_v50 = vmax.f32 %v1147_v19, %v1151_v5 }
 0x2cd   : > { %v1153_v22 = vsub.f32 %v1147_v19, %v1152_v50  ;;  %1233 = vst.msk [vmem:[%s2165_s21] sm:$0x1] %vm1172_vm4, %v1152_v50  ;;  %1158 = vperm.xlu1 %1612, %v1152_v50  }
 0x2cf   : > { %v1154_v17 = vmul.f32 1.442695, %v1153_v22 }
 0x2d1   : > { %1709 = vpow2.f32 %v1154_v17 }
 0x2d7   : > { %v1710_v26 = vpop.eup %1709 }
 0x2d8   : > { %1217 = vperm.xlu1 %1612, %v1710_v26  }
 0x33f   : > { %v1159_v21 = vpop.permute.xlu1 %1158 }
 0x340   : > { %v1161_v27 = vperm.slane %v1159_v21, 0 }
 0x342   : > { %v1162_v24 = vsub.f32 %v1145_v45, %v1161_v27 }
 0x344   : > { %v1163_v33 = vmul.f32 1.442695, %v1162_v24 }
 0x346   : > { %1711 = vpow2.f32 %v1163_v33 }
 0x34c   : > { %v1712_v38 = vpop.eup %1711 }
 0x34d   : > { %1479 = vmatmul.msk.f32.vlgmr.msrb.gmra.mxu1 %vm1144_vm2, %v1712_v38  ;;  %1480 = vmatmul.msk.f32.vlgmr.msrb.gmra.mxu2 %vm1144_vm2, %v1712_v38  ;;  %v1165_v39 = vsel %vm1144_vm2, %v1712_v38, 0.0 }
 0x34e   : > { %v1168_v40 = vsel %vm1148_vm3, %v1165_v39, 0.0 }
 0x34f   : > { %1169 = vadd.xlane.f32.xlu2 %v1168_v40 }
 0x350   : > { %1800 = shalt.err (!%p1797_p3)
}
 0x351   : > { %1494 = dma.vmem_to_hbm [thread:$0]  (%p2107_p11), %s1259_s3, 16, %s1261_s5, %s1235_s4   ;;  %v1166_v43 = vld [vmem:[%s2170_s19] sm:$0x1]  ;;  %v1218_v52 = vpop.permute.xlu1 %1217  ;;  %v1214_v41 = vld [vmem:[%s2173_s26] sm:$0x3]  ;;  %vm1230_vm5 = vcmp.lt.s32.totalorder %v1140_v6, 256 }
 0x352   : > { %v1167_v28 = vmul.f32 %v1710_v26, %v1166_v43  ;;  %v1220_v8 = vperm.slane %v1218_v52, 0  ;;  %s2709_s0 = sshll.u32 %s1919_s13, 1  ;;  %s2710_s20 = sld [smem:[#allocation30_spill]] }
 0x353   : > { %s1278_s18 = sshll.u32 %s2173_s26, 4  ;;  %s2712_s13 = sand.u32 1, %s1895_s30   ;;  %s1279_s18 = int_to_ptr.vmem [resolvable:$true] %s1278_s18 }
 0x354   : > { %v1221_v54 = vmul.f32 %v1220_v8, %v1214_v41 }
 0x358   : > { %s1276_s28 = scalar_lea.hbm %s2710_s20, %s2709_s0  ;;  %s1821_s4 = scalar_lea.hbm %s2710_s20, 4 }
 0x359   : > { %s1280_s29 = sshll.u32 %s1276_s28, 4  ;;  %s1281_s29 = int_to_ptr.hbm [resolvable:$true] %s1280_s29 }
 0x35a   : > { %s1815_s10 = sshra.s32 %s1281_s29, 4  ;;  %s1816_s10 = int_to_ptr.hbm [resolvable:$true] %s1815_s10 }
 0x35b   : > { %s1817_s25 = scalar_lea.hbm %s1816_s10, 2  ;;  %p1822_p1 = scmp.lt.s32.totalorder %s1816_s10, %s2710_s20 }
 0x35c   : > { %p1818_p11 = scmp.ne.s32.totalorder %s1816_s10, %s1817_s25  ;;  %p1823_p4 = scmp.lt.s32.totalorder %s1821_s4, %s1817_s25 }
 0x35e   : > { %p1819_p5 = pnand %p1818_p11, %p2070_p8  ;;  %p1824_p7 = por %p1823_p4, %p1822_p1 }
 0x360   : > { %p1820_p12 = pneg %p1819_p5 }
 0x362   : > { %p1825_p9 = pnand %p1824_p7, %p1820_p12 }
 0x3c2   : > { %v1170_v44 = vpop.xlane.xlu2 %1169 }
 0x3c3   : > { %v1171_v47 = vadd.f32 %v1170_v44, %v1167_v28 }
 0x3c5   : > { %1173 = vst.msk [vmem:[%s2170_s19] sm:$0x1] %vm1172_vm4, %v1171_v47  ;;  %s1245_s19 = scalar_lea.sflag [#allocation10], %s2712_s13 }
 0x3ca   : > { %v1191_v55 = vpop.f32.mrf.mxu1 }
 0x3d0   : > { %v1211_v58 = vpop.f32.mrf.mxu2 }
 0x3d1   : > { %v1224_v53 = vrot.slane %v1211_v58, 7 }
 0x3d3   : > { %v1225_v56 = vsel %vm1148_vm3, %v1191_v55, %v1224_v53 }
 0x3d4   : > { %v1227_v30 = vadd.f32 %v1225_v56, %v1221_v54 }
 0x3d6   : > { %1232 = vst.msk [vmem:[%s2173_s26] sm:$0x3] %vm1230_vm5, %v1227_v30 }
 0x3d7   : > { %1828 = shalt.err (!%p1825_p9)
}
 0x3d8   : > { %1495 = dma.vmem_to_hbm [thread:$0]  (%p2070_p8), %s1279_s18, 32, %s1281_s29, %s1245_s19  }
 0x3d9 PF: > { %s2713_s26 = sld [smem:[#allocation16_spill]]  ;;  %p1516_p13 = scmp.ge.s32.totalorder %s1931_s16, 2 }
 0x3db   : > { %p1507_p0 = pnand %p1516_p13, %p2062_p6 }
 0x3dd   : > { %p1508_p2 = pneg %p1507_p0 }
 0x3df   : > { %s1292_s21 = sand.u32 1, %s2713_s26  }
 0x3e0   : > { %s1293_s0 = scalar_lea.sflag [#allocation5], %s1292_s21 }
 0x3e1   : > { %1882 = dma.done.wait (%p1508_p2), %s1293_s0, 16  }
 0x3e2   : > { %1884 = vsyncadd (%p1508_p2), %s1293_s0, 4294967280  ;;  %s2715_s2 = sld [smem:[#allocation15_spill]]  ;;  %p1510_p3 = pnand %p1516_p13, %p2075_p10 }
 0x3e4   : > { %p1511_p11 = pneg %p1510_p3 }
 0x3e8   : > { %s1313_s28 = sand.u32 1, %s2715_s2  }
 0x3e9   : > { %s1314_s17 = scalar_lea.sflag [#allocation10], %s1313_s28 }
 0x3ea   : > { %1886 = dma.done.wait (%p1511_p11), %s1314_s17, 32  }
 0x3eb   : > { %1888 = vsyncadd (%p1511_p11), %s1314_s17, 4294967264  ;;  %s31_s16 = sadd.s32 1, %s1931_s16   ;;  %s2717_s4 = sld [smem:[#allocation18_spill]] }
 0x3ec   : > { %p28_p8 = scmp.ge.s32.totalorder %s31_s16, 6   ;;  %s2718_s18 = sld [smem:[#allocation23_spill]] }
 0x3ed   : > { %s2719_s29 = smov %s1895_s30  ;;  %s2720_s30 = smov %s1899_s9 }
 0x3ee   : > { %s2721_s9 = smov %s2125_s14  ;;  %s2722_s10 = smov %s1907_s11 }
 0x3ef   : > { %s2723_s11 = smov %s1911_s12  ;;  %s2724_s12 = smov %s2128_s8 }
 0x3f0   : > { %s2725_s13 = smov %s1927_s15  ;;  %s2726_s14 = smov %s2729_s1 }
 0x3f1   :  { %30 = sbr.rel (!%p28_p8) target bundleno = 20 (0x14), region = 134 }
 0x3f2   : > { %s2727_s15 = smov %s2718_s18 }
 0x3f6   :  { %1320 = vsyncpa [#allocation4], 1 }
 0x3f7   :  { %1322 = vsyncpa [#allocation4 + $0x1], 1 }
 0x3f8   :  { %1323 = vsyncpa [#allocation7], 1 }
 0x3f9   :  { %1324 = vsyncpa [#allocation5], 1 }
 0x3fa   :  { %1326 = vsyncpa [#allocation5 + $0x1], 1 }
 0x3fb   :  { %1327 = vsyncpa [#allocation10], 1 }
 0x3fc   :  { %1329 = vsyncpa [#allocation10 + $0x1], 1 }

</bundles_post_ra>
